<compile_context>
chip_gen: v6e
topology: v6e:2x2x1
jax: 0.10.0
libtpu: 0.0.40
codegen_flags: <defaults>
</compile_context>

<pallas_src>
import functools

import jax
import jax.numpy as jnp
import numpy as np
from jax import lax
from jax.experimental import pallas as pl
from jax.experimental.pallas import tpu as pltpu

_EPS = 1e-5


def _round_up(x, m):
    return ((x + m - 1) // m) * m


def _align_pad(n):
    """Lane alignment: 128 for small dims, 256 for large (fills v6e/v7x MXU)."""
    return _round_up(n, 256 if n >= 256 else 128)


def _vmem_limit_bytes():
    """Generation-aware scoped-VMEM request (v7x: 64 MiB/TC, v5e/v6e: 128 MiB)."""
    try:
        cap = int(pltpu.get_tpu_info().vmem_capacity_bytes)
    except Exception:  # older jax / attribute differences: assume the small part
        cap = 64 * 1024 * 1024
    return min(int(cap * 0.75), 96 * 1024 * 1024)


def _choose_tm(m, kc_pad, co_pad, vmem_budget, has_residual):
    """Largest M-tile (multiple of 16, <=2048) whose double-buffered streams fit."""
    per_row = 2 * (kc_pad * 2 + co_pad * 2 + (co_pad * 2 if has_residual else 0)) \
        + co_pad * 4  # f32 accumulator vregs / spills
    fixed = 2 * kc_pad * co_pad * 2 + 8 * co_pad * 4
    tm = (vmem_budget - fixed) // max(per_row, 1)
    tm = max(16, min(2048, tm, _round_up(m, 16)))
    return (tm // 16) * 16


# ----------------------------- Pallas kernels ------------------------------ #

def _fused_conv_bn_kernel(p_ref, w_ref, g_ref, b_ref, o_ref, *, m_real, relu):
    """Single-tile fast path: conv matmul + exact BN (centered var) + affine."""
    acc = jnp.dot(p_ref[...], w_ref[...], preferred_element_type=jnp.float32)
    inv_m = 1.0 / m_real
    mean = jnp.sum(acc, axis=0, keepdims=True) * inv_m      # padded rows are zero
    valid = lax.broadcasted_iota(jnp.int32, acc.shape, 0) < m_real
    centered = jnp.where(valid, acc - mean, 0.0)
    var = jnp.sum(centered * centered, axis=0, keepdims=True) * inv_m
    y = centered * (g_ref[...] * lax.rsqrt(var + _EPS)) + b_ref[...]
    if relu:
        y = jnp.maximum(y, 0.0)
    o_ref[...] = y.astype(o_ref.dtype)


def _fused_conv_bn_res_kernel(p_ref, w_ref, g_ref, b_ref, r_ref, o_ref, *, m_real):
    """Single-tile fast path with residual add + final ReLU."""
    acc = jnp.dot(p_ref[...], w_ref[...], preferred_element_type=jnp.float32)
    inv_m = 1.0 / m_real
    mean = jnp.sum(acc, axis=0, keepdims=True) * inv_m
    valid = lax.broadcasted_iota(jnp.int32, acc.shape, 0) < m_real
    centered = jnp.where(valid, acc - mean, 0.0)
    var = jnp.sum(centered * centered, axis=0, keepdims=True) * inv_m
    y = centered * (g_ref[...] * lax.rsqrt(var + _EPS)) + b_ref[...] \
        + r_ref[...].astype(jnp.float32)
    o_ref[...] = jnp.maximum(y, 0.0).astype(o_ref.dtype)


def _conv_stats_kernel(p_ref, w_ref, sum_ref, sq_ref):
    """Pass 1 (tiled): conv matmul -> per-tile (sum, sumsq) partials only.

    No conv writeback; each tile owns its own (8, CO_pad) output block so the
    grid axis is fully parallel (megacore-shardable on v7x).  Host sums rows[::8].
    """
    acc = jnp.dot(p_ref[...], w_ref[...], preferred_element_type=jnp.float32)
    s = jnp.sum(acc, axis=0, keepdims=True)
    q = jnp.sum(acc * acc, axis=0, keepdims=True)
    sum_ref[...] = jnp.broadcast_to(s, sum_ref.shape)
    sq_ref[...] = jnp.broadcast_to(q, sq_ref.shape)


def _conv_apply_kernel(p_ref, w_ref, s_ref, b_ref, o_ref, *, relu):
    """Pass 2 (tiled): recompute conv matmul, apply folded BN affine [+ReLU]."""
    acc = jnp.dot(p_ref[...], w_ref[...], preferred_element_type=jnp.float32)
    y = acc * s_ref[...] + b_ref[...]
    if relu:
        y = jnp.maximum(y, 0.0)
    o_ref[...] = y.astype(o_ref.dtype)


def _conv_apply_res_kernel(p_ref, w_ref, s_ref, b_ref, r_ref, o_ref):
    """Pass 2 (tiled) with bf16 residual add (in f32) + final ReLU."""
    acc = jnp.dot(p_ref[...], w_ref[...], preferred_element_type=jnp.float32)
    y = acc * s_ref[...] + b_ref[...] + r_ref[...].astype(jnp.float32)
    o_ref[...] = jnp.maximum(y, 0.0).astype(o_ref.dtype)


# ------------------------------ glue / wrapper ------------------------------ #

def _extract_patches(x_nhwc, kh, kw, stride, pad):
    """im2col as one (M, KH*KW*Cin) bf16 slab; tap order matches HWIO weight reshape."""
    # TODO(synk): replace JAX-side im2col with in-kernel halo DMA
    # (memory_space=pl.ANY + pltpu.make_async_copy) to cut 3x3 activation HBM
    # traffic from ~2*(kh*kw)x the input to ~2x the input.
    n, h, w, cin = x_nhwc.shape
    ho = (h + 2 * pad - kh) // stride + 1
    wo = (w + 2 * pad - kw) // stride + 1
    xp = jnp.pad(x_nhwc.astype(jnp.bfloat16),
                 ((0, 0), (pad, pad), (pad, pad), (0, 0)))
    taps = [xp[:, i:i + stride * ho:stride, j:j + stride * wo:stride, :]
            for i in range(kh) for j in range(kw)]
    patches = jnp.concatenate(taps, axis=-1) if len(taps) > 1 else taps[0]
    return patches.reshape(n * ho * wo, kh * kw * cin), ho, wo


def conv_bn_pallas(x_nhwc, w_hwio, gamma, beta, *, stride=1, residual=None, relu=True):
    """Fused conv(pad='same') -> BN(train) [-> +residual] [-> ReLU]. NHWC in, bf16 NHWC out."""
    n = x_nhwc.shape[0]
    kh, kw, cin, cout = w_hwio.shape
    pad = (kh - 1) // 2
    patches, ho, wo = _extract_patches(x_nhwc, kh, kw, stride, pad)
    m = n * ho * wo
    kc = kh * kw * cin

    kc_pad = _align_pad(kc)
    co_pad = _align_pad(cout)
    vmem_limit = _vmem_limit_bytes()
    tm = _choose_tm(m, kc_pad, co_pad, (vmem_limit * 2) // 3, residual is not None)
    m_pad = _round_up(m, tm)
    grid_m = m_pad // tm

    patches = jnp.pad(patches, ((0, m_pad - m), (0, kc_pad - kc)))
    w_flat = jnp.pad(w_hwio.reshape(kc, cout).astype(jnp.bfloat16),
                     ((0, kc_pad - kc), (0, co_pad - cout)))
    g = jnp.pad(gamma.astype(jnp.float32).reshape(1, cout),
                ((0, 0), (0, co_pad - cout)))
    b = jnp.pad(beta.astype(jnp.float32).reshape(1, cout),
                ((0, 0), (0, co_pad - cout)))
    res = None
    if residual is not None:
        res = jnp.pad(residual.astype(jnp.bfloat16).reshape(m, cout),
                      ((0, m_pad - m), (0, co_pad - cout)))

    compiler_params = pltpu.CompilerParams(
        dimension_semantics=("parallel",),          # both passes megacore-shardable
        vmem_limit_bytes=vmem_limit)
    flops_mm = 2 * m_pad * kc_pad * co_pad

    p_spec = pl.BlockSpec((tm, kc_pad), lambda i: (i, 0))
    w_spec = pl.BlockSpec((kc_pad, co_pad), lambda i: (0, 0))
    v_spec = pl.BlockSpec((1, co_pad), lambda i: (0, 0))       # per-channel vectors
    r_spec = pl.BlockSpec((tm, co_pad), lambda i: (i, 0))
    o_spec = pl.BlockSpec((tm, co_pad), lambda i: (i, 0))

    if grid_m == 1:
        # --- single-tile fast path: one pallas_call does conv + BN + affine ---
        if residual is not None:
            kern = functools.partial(_fused_conv_bn_res_kernel, m_real=m)
            ins, in_specs = (patches, w_flat, g, b, res), \
                [p_spec, w_spec, v_spec, v_spec, r_spec]
        else:
            kern = functools.partial(_fused_conv_bn_kernel, m_real=m, relu=relu)
            ins, in_specs = (patches, w_flat, g, b), [p_spec, w_spec, v_spec, v_spec]
        out = pl.pallas_call(
            kern,
            out_shape=jax.ShapeDtypeStruct((m_pad, co_pad), jnp.bfloat16),
            grid=(1,),
            in_specs=in_specs,
            out_specs=o_spec,
            compiler_params=compiler_params,
            cost_estimate=pl.CostEstimate(
                flops=flops_mm, transcendentals=co_pad,
                bytes_accessed=patches.size * 2 + w_flat.size * 2 + 2 * co_pad * 4
                + (res.size * 2 if res is not None else 0) + m_pad * co_pad * 2),
        )(*ins)
        return out[:m, :cout].reshape(n, ho, wo, cout)

    # ------- Pass 1: per-tile conv + (sum, sumsq) partials, fully parallel -------
    part_sum, part_sq = pl.pallas_call(
        _conv_stats_kernel,
        out_shape=(jax.ShapeDtypeStruct((grid_m * 8, co_pad), jnp.float32),
                   jax.ShapeDtypeStruct((grid_m * 8, co_pad), jnp.float32)),
        grid=(grid_m,),
        in_specs=[p_spec, w_spec],
        out_specs=(pl.BlockSpec((8, co_pad), lambda i: (i, 0)),
                   pl.BlockSpec((8, co_pad), lambda i: (i, 0))),
        compiler_params=compiler_params,
        cost_estimate=pl.CostEstimate(
            flops=flops_mm, transcendentals=0,
            bytes_accessed=patches.size * 2 + w_flat.size * 2
            + 2 * grid_m * 8 * co_pad * 4),
    )(patches, w_flat)

    # Fold training-mode BN into a per-channel affine using global batch stats.
    # Padded rows are all-zero -> contribute nothing; divide by the true M.
    # NOTE: f32 E[x^2]-E[x]^2 across tiles; fine at these scales (Welford-style
    # merging would be preferable for very deep nets / huge M).
    ch_sum = jnp.sum(part_sum[::8], axis=0, keepdims=True)
    ch_sq = jnp.sum(part_sq[::8], axis=0, keepdims=True)
    mean = ch_sum / float(m)
    var = jnp.maximum(ch_sq / float(m) - mean * mean, 0.0)
    scale = g * lax.rsqrt(var + _EPS)
    bias = b - mean * scale

    # ------- Pass 2: recompute conv, apply affine (+residual)(+ReLU), bf16 out ----
    if residual is not None:
        kern = _conv_apply_res_kernel
        ins, in_specs = (patches, w_flat, scale, bias, res), \
            [p_spec, w_spec, v_spec, v_spec, r_spec]
    else:
        kern = functools.partial(_conv_apply_kernel, relu=relu)
        ins, in_specs = (patches, w_flat, scale, bias), \
            [p_spec, w_spec, v_spec, v_spec]
    out = pl.pallas_call(
        kern,
        out_shape=jax.ShapeDtypeStruct((m_pad, co_pad), jnp.bfloat16),
        grid=(grid_m,),
        in_specs=in_specs,
        out_specs=o_spec,
        compiler_params=compiler_params,
        cost_estimate=pl.CostEstimate(
            flops=flops_mm, transcendentals=0,
            bytes_accessed=patches.size * 2 + w_flat.size * 2 + 2 * co_pad * 4
            + (res.size * 2 if res is not None else 0) + m_pad * co_pad * 2),
    )(*ins)
    return out[:m, :cout].reshape(n, ho, wo, cout)


class PallasBlock:
    """JAX/Pallas port of the PyTorch `Block` module (inputs/outputs NCHW)."""

    def __init__(self, key, in_channel, out_channel, strides=1, same_shape=True):
        self.same_shape = same_shape
        if not same_shape:
            strides = 2
        self.strides = strides
        k1, k2, k3 = jax.random.split(key, 3)
        scale = 0.1
        self.w1 = scale * jax.random.normal(k1, (3, 3, in_channel, out_channel), jnp.float32)
        self.w2 = scale * jax.random.normal(k2, (3, 3, out_channel, out_channel), jnp.float32)
        self.g1 = jnp.ones((out_channel,), jnp.float32)
        self.b1 = jnp.zeros((out_channel,), jnp.float32)
        self.g2 = jnp.ones((out_channel,), jnp.float32)
        self.b2 = jnp.zeros((out_channel,), jnp.float32)
        if not same_shape:
            self.w3 = scale * jax.random.normal(k3, (1, 1, in_channel, out_channel), jnp.float32)
            self.g3 = jnp.ones((out_channel,), jnp.float32)
            self.b3 = jnp.zeros((out_channel,), jnp.float32)

    def __call__(self, x_nchw):
        x = jnp.transpose(x_nchw, (0, 2, 3, 1))  # NCHW -> NHWC
        out = conv_bn_pallas(x, self.w1, self.g1, self.b1,
                             stride=self.strides, relu=True)          # bf16
        if self.same_shape:
            shortcut = x
        else:
            shortcut = conv_bn_pallas(x, self.w3, self.g3, self.b3,
                                      stride=self.strides, relu=False)  # bf16
        y = conv_bn_pallas(out, self.w2, self.g2, self.b2,
                           stride=1, residual=shortcut)               # add+ReLU fused
        return jnp.transpose(y, (0, 3, 1, 2))  # NCHW, bf16


# ------------------------------- pure-JAX ref ------------------------------- #

def _ref_conv(x_nhwc, w_hwio, stride, pad):
    return lax.conv_general_dilated(
        x_nhwc.astype(jnp.bfloat16), w_hwio.astype(jnp.bfloat16),
        (stride, stride), ((pad, pad), (pad, pad)),
        dimension_numbers=("NHWC", "HWIO", "NHWC"),
        preferred_element_type=jnp.float32)


def _ref_bn(y, gamma, beta):
    mean = jnp.mean(y, axis=(0, 1, 2), keepdims=True)
    var = jnp.mean(jnp.square(y - mean), axis=(0, 1, 2), keepdims=True)
    return (y - mean) * lax.rsqrt(var + _EPS) * gamma.reshape(1, 1, 1, -1) \
        + beta.reshape(1, 1, 1, -1)


def _ref_block(blk: PallasBlock, x_nchw):
    # Mirrors the kernel's deliberate bf16 streams (MXU inputs, residual) so the
    # comparison isolates kernel bugs rather than dtype policy.
    x = jnp.transpose(x_nchw, (0, 2, 3, 1))
    out = jax.nn.relu(_ref_bn(_ref_conv(x, blk.w1, blk.strides, 1), blk.g1, blk.b1))
    out = _ref_bn(_ref_conv(out, blk.w2, 1, 1), blk.g2, blk.b2)
    if blk.same_shape:
        sc = x
    else:
        sc = _ref_bn(_ref_conv(x, blk.w3, blk.strides, 0), blk.g3, blk.b3)
    sc = sc.astype(jnp.bfloat16).astype(jnp.float32)
    return jnp.transpose(jax.nn.relu(out + sc), (0, 3, 1, 2))


# ----------------------------------- main ----------------------------------- #

if __name__ == "__main__":
    key = jax.random.PRNGKey(0)
    kx, kp1, kp2, kx3 = jax.random.split(key, 4)

    def _check(y, y_ref):
        np.testing.assert_allclose(np.asarray(y.astype(jnp.float32)),
                                   np.asarray(y_ref), rtol=1e-2, atol=1e-2)

    # 1) identity-shortcut block (single-tile fused fast path)
    x = jax.random.normal(kx, (2, 8, 16, 16), jnp.float32)
    blk = PallasBlock(kp1, 8, 8, strides=1, same_shape=True)
    y = jax.block_until_ready(blk(x))
    _check(y, _ref_block(blk, x))

    # 2) projection-shortcut block: stride 2, 8 -> 16 channels, 1x1 conv + BN shortcut
    blk2 = PallasBlock(kp2, 8, 16, same_shape=False)
    y2 = jax.block_until_ready(blk2(x))
    assert y2.shape == (2, 16, 8, 8)
    _check(y2, _ref_block(blk2, x))

    # 3) larger spatial so M > TM: exercises the tiled stats+recompute path
    x3 = jax.random.normal(kx3, (2, 8, 40, 40), jnp.float32)
    blk3 = PallasBlock(kp1, 8, 8, strides=1, same_shape=True)
    y3 = jax.block_until_ready(blk3(x3))
    _check(y3, _ref_block(blk3, x3))

    print("KERNEL_OK")
</pallas_src>

<mosaic_0001>
module attributes {stable_mosaic.version = 11 : i64} {
  func.func @_fused_conv_bn_kernel(%arg0: i32, %arg1: memref<512x128xbf16, #tpu.memory_space<vmem>>, %arg2: memref<128x128xbf16, #tpu.memory_space<vmem>>, %arg3: memref<1x128xf32, #tpu.memory_space<vmem>>, %arg4: memref<1x128xf32, #tpu.memory_space<vmem>>, %arg5: memref<512x128xbf16, #tpu.memory_space<vmem>>) attributes {dimension_semantics = [#tpu.dimension_semantics<parallel>], iteration_bounds = array<i64: 1>, scalar_prefetch = 0 : i64, scratch_operands = 0 : i64, tpu.core_type = #tpu.core_type<tc>, window_params = [{transform_indices = @transform_0, window_bounds = array<i64: 512, 128>}, {pipeline_mode = #tpu.pipeline_mode<synchronous>, transform_indices = @transform_1, window_bounds = array<i64: 128, 128>}, {pipeline_mode = #tpu.pipeline_mode<synchronous>, transform_indices = @transform_2, window_bounds = array<i64: 1, 128>}, {pipeline_mode = #tpu.pipeline_mode<synchronous>, transform_indices = @transform_3, window_bounds = array<i64: 1, 128>}, {transform_indices = @transform_4, window_bounds = array<i64: 512, 128>}]} {
    %c0 = arith.constant 0 : index
    %c0_0 = arith.constant 0 : index
    %0 = vector.load %arg1[%c0, %c0_0] : memref<512x128xbf16, #tpu.memory_space<vmem>>, vector<512x128xbf16>
    %c0_1 = arith.constant 0 : index
    %c0_2 = arith.constant 0 : index
    %1 = vector.load %arg2[%c0_1, %c0_2] : memref<128x128xbf16, #tpu.memory_space<vmem>>, vector<128x128xbf16>
    %cst = arith.constant dense<0.000000e+00> : vector<512x128xf32>
    %2 = tpu.matmul %0, %1, %cst {dimension_numbers = #tpu.dot_dimension_numbers<[1], [0], [0], [1], [0, 0, 1, 1], [], []>} : vector<512x128xbf16>, vector<128x128xbf16>, vector<512x128xf32> -> vector<512x128xf32>
    %cst_3 = arith.constant dense<0.000000e+00> : vector<128xf32>
    %3 = vector.multi_reduction <add>, %2, %cst_3 [0] : vector<512x128xf32> to vector<128xf32>
    %4 = vector.shape_cast %3 : vector<128xf32> to vector<1x128xf32>
    %cst_4 = arith.constant 0.001953125 : f32
    %5 = vector.broadcast %cst_4 : f32 to vector<1x128xf32>
    %6 = arith.mulf %4, %5 : vector<1x128xf32>
    %7 = tpu.iota {dimensions = array<i32: 0>} : vector<512x128xi32>
    %c512_i32 = arith.constant 512 : i32
    %8 = vector.broadcast %c512_i32 : i32 to vector<512x128xi32>
    %9 = arith.cmpi slt, %7, %8 : vector<512x128xi32>
    %10 = vector.broadcast %6 : vector<1x128xf32> to vector<512x128xf32>
    %11 = arith.subf %2, %10 : vector<512x128xf32>
    %cst_5 = arith.constant 0.000000e+00 : f32
    %12 = vector.broadcast %cst_5 : f32 to vector<512x128xf32>
    %13 = arith.select %9, %11, %12 : vector<512x128xi1>, vector<512x128xf32>
    %14 = arith.mulf %13, %13 : vector<512x128xf32>
    %cst_6 = arith.constant dense<0.000000e+00> : vector<128xf32>
    %15 = vector.multi_reduction <add>, %14, %cst_6 [0] : vector<512x128xf32> to vector<128xf32>
    %16 = vector.shape_cast %15 : vector<128xf32> to vector<1x128xf32>
    %cst_7 = arith.constant 0.001953125 : f32
    %17 = vector.broadcast %cst_7 : f32 to vector<1x128xf32>
    %18 = arith.mulf %16, %17 : vector<1x128xf32>
    %c0_8 = arith.constant 0 : index
    %c0_9 = arith.constant 0 : index
    %19 = vector.load %arg3[%c0_8, %c0_9] : memref<1x128xf32, #tpu.memory_space<vmem>>, vector<1x128xf32>
    %cst_10 = arith.constant 9.99999974E-6 : f32
    %20 = vector.broadcast %cst_10 : f32 to vector<1x128xf32>
    %21 = arith.addf %18, %20 : vector<1x128xf32>
    %22 = math.rsqrt %21 : vector<1x128xf32>
    %23 = arith.mulf %19, %22 : vector<1x128xf32>
    %24 = vector.broadcast %23 : vector<1x128xf32> to vector<512x128xf32>
    %25 = arith.mulf %13, %24 : vector<512x128xf32>
    %c0_11 = arith.constant 0 : index
    %c0_12 = arith.constant 0 : index
    %26 = vector.load %arg4[%c0_11, %c0_12] : memref<1x128xf32, #tpu.memory_space<vmem>>, vector<1x128xf32>
    %27 = vector.broadcast %26 : vector<1x128xf32> to vector<512x128xf32>
    %28 = arith.addf %25, %27 : vector<512x128xf32>
    %cst_13 = arith.constant 0.000000e+00 : f32
    %29 = vector.broadcast %cst_13 : f32 to vector<512x128xf32>
    %30 = arith.maximumf %28, %29 : vector<512x128xf32>
    %31 = arith.truncf %30 : vector<512x128xf32> to vector<512x128xbf16>
    %c0_14 = arith.constant 0 : index
    %c0_15 = arith.constant 0 : index
    %32 = vector.load %arg5[%c0_14, %c0_15] : memref<512x128xbf16, #tpu.memory_space<vmem>>, vector<512x128xbf16>
    tpu.vector_store %arg5[%c0_14, %c0_15], %31 {strides = array<i32>} : memref<512x128xbf16, #tpu.memory_space<vmem>>, vector<512x128xbf16>,
    return
  }
  func.func @transform_0(%arg0: i32) -> (i32, i32) {
    %c0_i32 = arith.constant 0 : i32
    %c0_i32_0 = arith.constant 0 : i32
    return %arg0, %c0_i32 : i32, i32
  }
  func.func @transform_1(%arg0: i32) -> (i32, i32) {
    %c0_i32 = arith.constant 0 : i32
    %c0_i32_0 = arith.constant 0 : i32
    %c0_i32_1 = arith.constant 0 : i32
    return %c0_i32, %c0_i32_0 : i32, i32
  }
  func.func @transform_2(%arg0: i32) -> (i32, i32) {
    %c0_i32 = arith.constant 0 : i32
    %c0_i32_0 = arith.constant 0 : i32
    %c0_i32_1 = arith.constant 0 : i32
    return %c0_i32, %c0_i32_0 : i32, i32
  }
  func.func @transform_3(%arg0: i32) -> (i32, i32) {
    %c0_i32 = arith.constant 0 : i32
    %c0_i32_0 = arith.constant 0 : i32
    %c0_i32_1 = arith.constant 0 : i32
    return %c0_i32, %c0_i32_0 : i32, i32
  }
  func.func @transform_4(%arg0: i32) -> (i32, i32) {
    %c0_i32 = arith.constant 0 : i32
    %c0_i32_0 = arith.constant 0 : i32
    return %arg0, %c0_i32 : i32, i32
  }
}

</mosaic_0001>

<bundles_post_ra>
// kernel: tpu_custom_call.1
= control target key start
LH: loop header
LB: loop body
LE: loop exit
PB: predicated region body
PF: predicated region fallthrough
CT: control target
= control target key end

     0   :  { %9 = vsyncpa [#allocation3], 0  ;;  %s3353_s0 = inlined_call_operand.hbm [shape: bf16[512,128], index: 0, kind: input, shape index: {}]   ;;  %s3354_s1 = inlined_call_operand.hbm [shape: bf16[128,128], index: 1, kind: input, shape index: {}]   ;;  %s3355_s2 = inlined_call_operand.vmem [shape: f32[1,128], index: 2, kind: input, shape index: {}]   ;;  %s3356_s3 = inlined_call_operand.vmem [shape: f32[1,128], index: 3, kind: input, shape index: {}]   ;;  %s3357_s4 = inlined_call_operand.hbm [shape: bf16[512,128], index: 4, kind: output, shape index: {}]  }
   0x1   :  { %10 = vsyncpa [#allocation6], 0 }
   0x2   :  { %11 = vsyncpa [#allocation4], 0  ;;  %s2273_s15 = smov [#allocation2]  }
   0x3   :  { %s17_s16 = sshll.u32 %s2273_s15, 4  ;;  %s18_s16 = int_to_ptr.vmem [resolvable:$true] %s17_s16 }
   0x4   :  { %s2215_s17 = scalar_lea.vmem %s18_s16, 4096  ;;  %p2220_p1 = scmp.lt.s32.totalorder %s18_s16, %s18_s16 }
   0x5   :  { %p2216_p0 = scmp.ne.s32.totalorder %s18_s16, %s2215_s17  ;;  %p2221_p2 = scmp.lt.s32.totalorder %s2215_s17, %s2215_s17 }
   0x7   :  { %p2222_p3 = por %p2221_p2, %p2220_p1 }
   0x9   :  { %p2223_p4 = pnand %p2222_p3, %p2216_p0 }
   0xb   :  { %2226 = shalt.err (!%p2223_p4)
}
   0xc   :  { %s2274_s18 = smov 64   ;;  %s2275_s19 = smov 4  }
   0xd   :  { %23 = dma.hbm_to_vmem [thread:$0]  %s3353_s0, 4096, %s18_s16, [#allocation3], %s2274_s18, %s2274_s18, %s2275_s19  }
   0xe   :  { %s2276_s22 = smov [#allocation5]  }
   0xf   :  { %s29_s23 = sshll.u32 %s2276_s22, 4  ;;  %s30_s23 = int_to_ptr.vmem [resolvable:$true] %s29_s23 }
  0x10   :  { %s2235_s24 = scalar_lea.vmem %s30_s23, 1024  ;;  %p2240_p6 = scmp.lt.s32.totalorder %s30_s23, %s30_s23 }
  0x11   :  { %p2236_p5 = scmp.ne.s32.totalorder %s30_s23, %s2235_s24  ;;  %p2241_p7 = scmp.lt.s32.totalorder %s2235_s24, %s2235_s24 }
  0x13   :  { %p2242_p8 = por %p2241_p7, %p2240_p6 }
  0x15   :  { %p2243_p9 = pnand %p2242_p8, %p2236_p5 }
  0x17   :  { %2246 = shalt.err (!%p2243_p9)
}
  0x18   :  { %35 = dma.hbm_to_vmem [thread:$0]  %s3354_s1, 1024, %s30_s23, [#allocation6], %s2274_s18, %s2274_s18, %s2275_s19  }
  0x19   :  { %2267 = dma.done.wait [#allocation3], 4096  }
  0x1a   :  { %2268 = vsyncadd [#allocation3], 4294963200 }
  0x1b   :  { %2269 = dma.done.wait [#allocation6], 1024  }
  0x1c   :  { %2270 = vsyncadd [#allocation6], 4294966272  ;;  %v2165_v0 = vld [vmem:[#allocation5 + $0x38] sm:$0xff]   ;;  %v2166_v1 = vld [vmem:[#allocation5 + $0x30] sm:$0xff]  }
  0x1d   :  { %2064 = vmatprep.subr.bf16.mxu0 %v2165_v0  ;;  %2144 = vmatprep.subr.bf16.mxu1 %v2165_v0  ;;  %v2167_v2 = vld [vmem:[#allocation5 + $0x28] sm:$0xff]   ;;  %v2168_v3 = vld [vmem:[#allocation5 + $0x20] sm:$0xff]   ;;  %v2169_v5 = vld [vmem:[#allocation5 + $0x18] sm:$0xff]  }
  0x1e   :  { %2065 = vmatpush3.bf16.msra.mxu0 %v2165_v0  ;;  %2152 = vmatpush3.bf16.msra.mxu1 %v2165_v0  ;;  %v2173_v4 = vld [vmem:[#allocation2] sm:$0xff]   ;;  %v2170_v6 = vld [vmem:[#allocation5 + $0x10] sm:$0xff]   ;;  %v2171_v7 = vld [vmem:[#allocation5 + $0x8] sm:$0xff]  }
  0x1f   :  { %2066 = vmatprep.subr.bf16.mxu0 %v2166_v1  ;;  %2145 = vmatprep.subr.bf16.mxu1 %v2166_v1  ;;  %v2172_v8 = vld [vmem:[#allocation5] sm:$0xff]   ;;  %v2174_v10 = vld [vmem:[#allocation2 + $0x8] sm:$0xff]   ;;  %v2175_v11 = vld [vmem:[#allocation2 + $0x10] sm:$0xff]  }
  0x20   :  { %2080 = vmatprep.mubr.bf16.mxu0 %v2173_v4  ;;  %v2189_v9 = vld [vmem:[#allocation2 + $0x80] sm:$0xff]   ;;  %v2190_v12 = vld [vmem:[#allocation2 + $0x88] sm:$0xff]   ;;  %v2191_v13 = vld [vmem:[#allocation2 + $0x90] sm:$0xff]  }
  0x21   :  { %2112 = vmatprep.mubr.bf16.mxu1 %v2189_v9  ;;  %v2176_v14 = vld [vmem:[#allocation2 + $0x18] sm:$0xff]   ;;  %v2177_v15 = vld [vmem:[#allocation2 + $0x20] sm:$0xff]   ;;  %v2178_v18 = vld [vmem:[#allocation2 + $0x28] sm:$0xff]  }
  0x22   :  { %2067 = vmatpush3.bf16.msra.mxu0 %v2166_v1  ;;  %2153 = vmatpush3.bf16.msra.mxu1 %v2166_v1  ;;  %v2192_v16 = vld [vmem:[#allocation2 + $0x98] sm:$0xff]   ;;  %v2193_v17 = vld [vmem:[#allocation2 + $0xa0] sm:$0xff]   ;;  %v2194_v19 = vld [vmem:[#allocation2 + $0xa8] sm:$0xff]  }
  0x23   :  { %2068 = vmatprep.subr.bf16.mxu0 %v2167_v2  ;;  %2146 = vmatprep.subr.bf16.mxu1 %v2167_v2  ;;  %v2179_v20 = vld [vmem:[#allocation2 + $0x30] sm:$0xff]   ;;  %v2180_v22 = vld [vmem:[#allocation2 + $0x38] sm:$0xff]   ;;  %v2181_v24 = vld [vmem:[#allocation2 + $0x40] sm:$0xff]  }
  0x24   :  { %v2195_v21 = vld [vmem:[#allocation2 + $0xb0] sm:$0xff]   ;;  %v2196_v23 = vld [vmem:[#allocation2 + $0xb8] sm:$0xff]   ;;  %v2197_v25 = vld [vmem:[#allocation2 + $0xc0] sm:$0xff]  }
  0x25   :  { %v2182_v26 = vld [vmem:[#allocation2 + $0x48] sm:$0xff]   ;;  %v2183_v28 = vld [vmem:[#allocation2 + $0x50] sm:$0xff]   ;;  %v2184_v30 = vld [vmem:[#allocation2 + $0x58] sm:$0xff]  }
  0x26   :  { %2069 = vmatpush3.bf16.msra.mxu0 %v2167_v2  ;;  %2154 = vmatpush3.bf16.msra.mxu1 %v2167_v2  ;;  %v2198_v27 = vld [vmem:[#allocation2 + $0xc8] sm:$0xff]   ;;  %v2199_v29 = vld [vmem:[#allocation2 + $0xd0] sm:$0xff]   ;;  %v2200_v31 = vld [vmem:[#allocation2 + $0xd8] sm:$0xff]  }
  0x27   :  { %2070 = vmatprep.subr.bf16.mxu0 %v2168_v3  ;;  %2147 = vmatprep.subr.bf16.mxu1 %v2168_v3  ;;  %v2185_v32 = vld [vmem:[#allocation2 + $0x60] sm:$0xff]   ;;  %v2186_v34 = vld [vmem:[#allocation2 + $0x68] sm:$0xff]   ;;  %v2187_v36 = vld [vmem:[#allocation2 + $0x70] sm:$0xff]  }
  0x28   :  { %v2201_v33 = vld [vmem:[#allocation2 + $0xe0] sm:$0xff]   ;;  %v2202_v35 = vld [vmem:[#allocation2 + $0xe8] sm:$0xff]   ;;  %v2203_v37 = vld [vmem:[#allocation2 + $0xf0] sm:$0xff]  }
  0x29   :  { %v2188_v38 = vld [vmem:[#allocation2 + $0x78] sm:$0xff]  }
  0x2a   :  { %2071 = vmatpush3.bf16.msra.mxu0 %v2168_v3  ;;  %2155 = vmatpush3.bf16.msra.mxu1 %v2168_v3  ;;  %v2204_v39 = vld [vmem:[#allocation2 + $0xf8] sm:$0xff]  }
  0x2b   :  { %2072 = vmatprep.subr.bf16.mxu0 %v2169_v5  ;;  %2148 = vmatprep.subr.bf16.mxu1 %v2169_v5 }
  0x2e   :  { %2073 = vmatpush3.bf16.msra.mxu0 %v2169_v5  ;;  %2156 = vmatpush3.bf16.msra.mxu1 %v2169_v5 }
  0x2f   :  { %2074 = vmatprep.subr.bf16.mxu0 %v2170_v6  ;;  %2149 = vmatprep.subr.bf16.mxu1 %v2170_v6 }
  0x32   :  { %2075 = vmatpush3.bf16.msra.mxu0 %v2170_v6  ;;  %2157 = vmatpush3.bf16.msra.mxu1 %v2170_v6 }
  0x33   :  { %2076 = vmatprep.subr.bf16.mxu0 %v2171_v7  ;;  %2150 = vmatprep.subr.bf16.mxu1 %v2171_v7 }
  0x36   :  { %2077 = vmatpush3.bf16.msra.mxu0 %v2171_v7  ;;  %2158 = vmatpush3.bf16.msra.mxu1 %v2171_v7 }
  0x37   :  { %2078 = vmatprep.subr.bf16.mxu0 %v2172_v8  ;;  %2151 = vmatprep.subr.bf16.mxu1 %v2172_v8 }
  0x3a   :  { %2079 = vmatpush3.bf16.msra.mxu0 %v2172_v8  ;;  %2159 = vmatpush3.bf16.msra.mxu1 %v2172_v8 }
  0x3d   :  { %2081 = vmatmul.mubr.bf16.vlgmr.msra.gmra.mxu0 %v2174_v10  ;;  %2113 = vmatmul.mubr.bf16.vlgmr.msra.gmra.mxu1 %v2190_v12 }
  0x3e   :  { %2084 = vmatprep.mubr.bf16.mxu0 %v2175_v11  ;;  %2116 = vmatprep.mubr.bf16.mxu1 %v2191_v13 }
  0x45   :  { %2085 = vmatmul.mubr.bf16.gmra.mxu0 %v2176_v14  ;;  %2117 = vmatmul.mubr.bf16.gmra.mxu1 %v2192_v16 }
  0x46   :  { %2088 = vmatprep.mubr.bf16.mxu0 %v2177_v15  ;;  %2120 = vmatprep.mubr.bf16.mxu1 %v2193_v17 }
  0x4d   :  { %2089 = vmatmul.mubr.bf16.gmra.mxu0 %v2178_v18  ;;  %2121 = vmatmul.mubr.bf16.gmra.mxu1 %v2194_v19 }
  0x4e   :  { %2092 = vmatprep.mubr.bf16.mxu0 %v2179_v20  ;;  %2124 = vmatprep.mubr.bf16.mxu1 %v2195_v21 }
  0x55   :  { %2093 = vmatmul.mubr.bf16.gmra.mxu0 %v2180_v22  ;;  %2125 = vmatmul.mubr.bf16.gmra.mxu1 %v2196_v23 }
  0x56   :  { %2096 = vmatprep.mubr.bf16.mxu0 %v2181_v24  ;;  %2128 = vmatprep.mubr.bf16.mxu1 %v2197_v25 }
  0x5d   :  { %2097 = vmatmul.mubr.bf16.gmra.mxu0 %v2182_v26  ;;  %2129 = vmatmul.mubr.bf16.gmra.mxu1 %v2198_v27 }
  0x5e   :  { %2100 = vmatprep.mubr.bf16.mxu0 %v2183_v28  ;;  %2132 = vmatprep.mubr.bf16.mxu1 %v2199_v29 }
  0x65   :  { %2101 = vmatmul.mubr.bf16.gmra.mxu0 %v2184_v30  ;;  %2133 = vmatmul.mubr.bf16.gmra.mxu1 %v2200_v31 }
  0x66   :  { %2104 = vmatprep.mubr.bf16.mxu0 %v2185_v32  ;;  %2136 = vmatprep.mubr.bf16.mxu1 %v2201_v33 }
  0x6d   :  { %2105 = vmatmul.mubr.bf16.gmra.mxu0 %v2186_v34  ;;  %2137 = vmatmul.mubr.bf16.gmra.mxu1 %v2202_v35 }
  0x6e   :  { %2108 = vmatprep.mubr.bf16.mxu0 %v2187_v36  ;;  %2140 = vmatprep.mubr.bf16.mxu1 %v2203_v37 }
  0x75   :  { %2109 = vmatmul.mubr.bf16.gmra.mxu0 %v2188_v38  ;;  %2141 = vmatmul.mubr.bf16.gmra.mxu1 %v2204_v39 }
  0xfd   :  { %v2315_v40 = vpop.f32.mrf.mxu0  ;;  %v2319_v42 = vpop.f32.mrf.mxu1 }
  0xff   :  { %v2317_v41 = vpop.f32.mrf.mxu0  ;;  %v2325_v45 = vpop.f32.mrf.mxu1 }
 0x101   :  { %v2321_v43 = vpop.f32.mrf.mxu0  ;;  %v2334_v50 = vpop.f32.mrf.mxu1 }
 0x103   :  { %v2323_v44 = vpop.f32.mrf.mxu0  ;;  %v2342_v55 = vpop.f32.mrf.mxu1 }
 0x104   :  { %v656_v46 = vadd.f32 %v2323_v44, %v2317_v41 }
 0x105   :  { %v2329_v47 = vpop.f32.mrf.mxu0  ;;  %v2350_v60 = vpop.f32.mrf.mxu1 }
 0x106   :  { %v657_v48 = vadd.f32 %v2315_v40, %v656_v46 }
 0x107   :  { %v2332_v49 = vpop.f32.mrf.mxu0  ;;  %v2358_v1 = vpop.f32.mrf.mxu1 }
 0x108   :  { %v658_v51 = vadd.f32 %v2321_v43, %v657_v48 }
 0x109   :  { %v2337_v52 = vpop.f32.mrf.mxu0  ;;  %v2366_v6 = vpop.f32.mrf.mxu1 }
 0x10a   :  { %v659_v53 = vadd.f32 %v658_v51, %v2332_v49  ;;  %3391 = vst [vmem:[#allocation11_spill] sm:$0xff] %v2366_v6 }
 0x10b   :  { %v2340_v54 = vpop.f32.mrf.mxu0  ;;  %v2374_v11 = vpop.f32.mrf.mxu1 }
 0x10c   :  { %v660_v56 = vadd.f32 %v659_v53, %v2340_v54 }
 0x10d   :  { %v2345_v57 = vpop.f32.mrf.mxu0  ;;  %v2382_v16 = vpop.f32.mrf.mxu1 }
 0x10e   :  { %v661_v58 = vadd.f32 %v2329_v47, %v660_v56 }
 0x10f   :  { %v2348_v59 = vpop.f32.mrf.mxu0  ;;  %v2390_v21 = vpop.f32.mrf.mxu1 }
 0x110   :  { %v662_v61 = vadd.f32 %v2337_v52, %v661_v58 }
 0x111   :  { %v2353_v62 = vpop.f32.mrf.mxu0  ;;  %v2398_v26 = vpop.f32.mrf.mxu1 }
 0x112   :  { %v663_v63 = vadd.f32 %v662_v61, %v2348_v59  ;;  %3392 = vst [vmem:[#allocation12_spill] sm:$0xff] %v2398_v26 }
 0x113   :  { %v2356_v0 = vpop.f32.mrf.mxu0  ;;  %v2406_v31 = vpop.f32.mrf.mxu1 }
 0x114   :  { %v664_v2 = vadd.f32 %v663_v63, %v2356_v0  ;;  %3393 = vst [vmem:[#allocation13_spill] sm:$0xff] %v2406_v31 }
 0x115   :  { %v2361_v3 = vpop.f32.mrf.mxu0  ;;  %v2414_v36 = vpop.f32.mrf.mxu1 }
 0x116   :  { %v665_v4 = vadd.f32 %v2345_v57, %v664_v2 }
 0x117   :  { %v2364_v5 = vpop.f32.mrf.mxu0  ;;  %v2422_v48 = vpop.f32.mrf.mxu1 }
 0x118   :  { %v666_v7 = vadd.f32 %v2353_v62, %v665_v4 }
 0x119   :  { %v2369_v8 = vpop.f32.mrf.mxu0  ;;  %v2430_v61 = vpop.f32.mrf.mxu1 }
 0x11a   :  { %v667_v9 = vadd.f32 %v666_v7, %v2364_v5  ;;  %3394 = vst [vmem:[#allocation14_spill] sm:$0xff] %v2430_v61 }
 0x11b   :  { %v2372_v10 = vpop.f32.mrf.mxu0 }
 0x11c   :  { %v668_v12 = vadd.f32 %v667_v9, %v2372_v10  ;;  %v2438_v9 = vpop.f32.mrf.mxu1 }
 0x11d   :  { %v2377_v13 = vpop.f32.mrf.mxu0  ;;  %3395 = vst [vmem:[#allocation15_spill] sm:$0xff] %v2438_v9 }
 0x11e   :  { %v669_v14 = vadd.f32 %v2361_v3, %v668_v12 }
 0x11f   :  { %v2380_v15 = vpop.f32.mrf.mxu0 }
 0x120   :  { %v670_v17 = vadd.f32 %v2369_v8, %v669_v14 }
 0x121   :  { %v2385_v18 = vpop.f32.mrf.mxu0 }
 0x122   :  { %v671_v19 = vadd.f32 %v670_v17, %v2380_v15  ;;  %v2442_v17 = vpop.f32.mrf.mxu1 }
 0x123   :  { %v2388_v20 = vpop.f32.mrf.mxu0  ;;  %3396 = vst [vmem:[#allocation16_spill] sm:$0xff] %v2442_v17 }
 0x124   :  { %v672_v22 = vadd.f32 %v671_v19, %v2388_v20 }
 0x125   :  { %v2393_v23 = vpop.f32.mrf.mxu0 }
 0x126   :  { %v673_v24 = vadd.f32 %v2377_v13, %v672_v22 }
 0x127   :  { %v2396_v25 = vpop.f32.mrf.mxu0 }
 0x128   :  { %v674_v27 = vadd.f32 %v2385_v18, %v673_v24  ;;  %v2446_v24 = vpop.f32.mrf.mxu1 }
 0x129   :  { %v2401_v28 = vpop.f32.mrf.mxu0 }
 0x12a   :  { %v675_v29 = vadd.f32 %v674_v27, %v2396_v25 }
 0x12b   :  { %v2404_v30 = vpop.f32.mrf.mxu0 }
 0x12c   :  { %v676_v32 = vadd.f32 %v675_v29, %v2404_v30 }
 0x12d   :  { %v2409_v33 = vpop.f32.mrf.mxu0 }
 0x12e   :  { %v677_v34 = vadd.f32 %v2393_v23, %v676_v32  ;;  %v2450_v32 = vpop.f32.mrf.mxu1 }
 0x12f   :  { %v2412_v35 = vpop.f32.mrf.mxu0  ;;  %3397 = vst [vmem:[#allocation17_spill] sm:$0xff] %v2450_v32 }
 0x130   :  { %v678_v37 = vadd.f32 %v2401_v28, %v677_v34 }
 0x131   :  { %v2417_v38 = vpop.f32.mrf.mxu0 }
 0x132   :  { %v679_v39 = vadd.f32 %v678_v37, %v2412_v35 }
 0x133   :  { %v2420_v46 = vpop.f32.mrf.mxu0 }
 0x134   :  { %v680_v51 = vadd.f32 %v679_v39, %v2420_v46  ;;  %v2454_v39 = vpop.f32.mrf.mxu1 }
 0x135   :  { %v2425_v53 = vpop.f32.mrf.mxu0  ;;  %3398 = vst [vmem:[#allocation18_spill] sm:$0xff] %v2454_v39 }
 0x136   :  { %v681_v56 = vadd.f32 %v2409_v33, %v680_v51 }
 0x137   :  { %v2428_v58 = vpop.f32.mrf.mxu0 }
 0x138   :  { %v682_v63 = vadd.f32 %v2417_v38, %v681_v56 }
 0x139   :  { %v2433_v2 = vpop.f32.mrf.mxu0 }
 0x13a   :  { %v683_v4 = vadd.f32 %v682_v63, %v2428_v58  ;;  %v2458_v63 = vpop.f32.mrf.mxu1 }
 0x13b   :  { %v2436_v7 = vpop.f32.mrf.mxu0  ;;  %3399 = vst [vmem:[#allocation19_spill] sm:$0xff] %v2458_v63 }
 0x13c   :  { %v684_v12 = vadd.f32 %v683_v4, %v2436_v7 }
 0x13e   :  { %v685_v14 = vadd.f32 %v2425_v53, %v684_v12 }
 0x140   :  { %v686_v19 = vadd.f32 %v2433_v2, %v685_v14  ;;  %v2462_v14 = vpop.f32.mrf.mxu1 }
 0x141   :  { %3400 = vst [vmem:[#allocation20_spill] sm:$0xff] %v2462_v14 }
 0x142   :  { %v687_v22 = vadd.f32 %v686_v19, %v2325_v45 }
 0x144   :  { %v688_v27 = vadd.f32 %v687_v22, %v2342_v55 }
 0x146   :  { %v689_v29 = vadd.f32 %v2319_v42, %v688_v27  ;;  %v2466_v27 = vpop.f32.mrf.mxu1 }
 0x147   :  { %3401 = vst [vmem:[#allocation21_spill] sm:$0xff] %v2466_v27 }
 0x148   :  { %v690_v34 = vadd.f32 %v2334_v50, %v689_v29 }
 0x14a   :  { %v691_v37 = vadd.f32 %v690_v34, %v2358_v1 }
 0x14c   :  { %v692_v51 = vadd.f32 %v691_v37, %v2374_v11  ;;  %v2470_v37 = vpop.f32.mrf.mxu1 }
 0x14d   :  { %3402 = vst [vmem:[#allocation22_spill] sm:$0xff] %v2470_v37 }
 0x14e   :  { %v693_v56 = vadd.f32 %v2350_v60, %v692_v51 }
 0x150   :  { %v694_v4 = vadd.f32 %v2366_v6, %v693_v56  ;;  %v2474_v6 = vpop.f32.mrf.mxu1 }
 0x152   :  { %v695_v12 = vadd.f32 %v694_v4, %v2390_v21 }
 0x154   :  { %v696_v19 = vadd.f32 %v695_v12, %v2406_v31  ;;  %v2478_v31 = vpop.f32.mrf.mxu1 }
 0x155   :  { %3403 = vst [vmem:[#allocation23_spill] sm:$0xff] %v2478_v31 }
 0x156   :  { %v697_v22 = vadd.f32 %v2382_v16, %v696_v19 }
 0x158   :  { %v698_v29 = vadd.f32 %v2398_v26, %v697_v22  ;;  %v2482_v26 = vpop.f32.mrf.mxu1 }
 0x15a   :  { %v699_v34 = vadd.f32 %v698_v29, %v2422_v48 }
 0x15c   :  { %v700_v51 = vadd.f32 %v699_v34, %v2438_v9  ;;  %v2486_v9 = vpop.f32.mrf.mxu1 }
 0x15d   :  { %3404 = vst [vmem:[#allocation24_spill] sm:$0xff] %v2486_v9 }
 0x15e   :  { %v701_v56 = vadd.f32 %v2414_v36, %v700_v51 }
 0x160   :  { %v702_v4 = vadd.f32 %v2430_v61, %v701_v56  ;;  %v2490_v61 = vpop.f32.mrf.mxu1 }
 0x162   :  { %v703_v12 = vadd.f32 %v702_v4, %v2446_v24 }
 0x164   :  { %v704_v19 = vadd.f32 %v703_v12, %v2454_v39  ;;  %v2494_v39 = vpop.f32.mrf.mxu1 }
 0x166   :  { %v705_v22 = vadd.f32 %v2442_v17, %v704_v19 }
 0x168   :  { %v706_v29 = vadd.f32 %v2450_v32, %v705_v22  ;;  %v2498_v32 = vpop.f32.mrf.mxu1 }
 0x16a   :  { %v707_v34 = vadd.f32 %v706_v29, %v2462_v14 }
 0x16c   :  { %v708_v51 = vadd.f32 %v707_v34, %v2470_v37  ;;  %v644_v37 = vpop.f32.mrf.mxu1 }
 0x16e   :  { %v709_v56 = vadd.f32 %v2458_v63, %v708_v51 }
 0x170   :  { %v710_v4 = vadd.f32 %v2466_v27, %v709_v56 }
 0x172   :  { %v711_v12 = vadd.f32 %v710_v4, %v2478_v31 }
 0x174   :  { %v712_v19 = vadd.f32 %v711_v12, %v2486_v9 }
 0x176   :  { %v713_v22 = vadd.f32 %v2474_v6, %v712_v19 }
 0x178   :  { %v714_v29 = vadd.f32 %v2482_v26, %v713_v22 }
 0x17a   :  { %v715_v34 = vadd.f32 %v714_v29, %v2494_v39 }
 0x17c   :  { %v716_v51 = vadd.f32 %v715_v34, %v644_v37 }
 0x17e   :  { %v717_v63 = vadd.f32 %v2490_v61, %v716_v51 }
 0x180   :  { %v718_v56 = vadd.f32 %v2498_v32, %v717_v63 }
 0x182   :  { %v719_v27 = vrot.slane %v718_v56, 4 }
 0x184   :  { %v720_v4 = vadd.f32 %v719_v27, %v718_v56 }
 0x186   :  { %v721_v31 = vrot.slane %v720_v4, 2 }
 0x188   :  { %v722_v14 = vadd.f32 %v721_v31, %v720_v4 }
 0x18a   :  { %v723_v17 = vrot.slane %v722_v14, 1 }
 0x18c   :  { %v724_v12 = vadd.f32 %v723_v17, %v722_v14 }
 0x18e   :  { %v2504_v9 = vmul.f32 0.001953125, %v724_v12 }
 0x190   :  { %v2507_v19 = vsub.f32 %v644_v37, %v2504_v9  ;;  %v2511_v22 = vsub.f32 %v2317_v41, %v2504_v9  ;;  %v2515_v29 = vsub.f32 %v2323_v44, %v2504_v9  ;;  %v2519_v63 = vsub.f32 %v2315_v40, %v2504_v9 }
 0x191   :  { %v2527_v14 = vsub.f32 %v2321_v43, %v2504_v9  ;;  %v2531_v41 = vsub.f32 %v2332_v49, %v2504_v9  ;;  %v2537_v40 = vsub.f32 %v2340_v54, %v2504_v9  ;;  %v2543_v43 = vsub.f32 %v2329_v47, %v2504_v9 }
 0x192   :  { %v983_v31 = vmul.f32 %v2511_v22, %v2511_v22  ;;  %v984_v17 = vmul.f32 %v2515_v29, %v2515_v29  ;;  %v985_v44 = vmul.f32 %v2519_v63, %v2519_v63  ;;  %v2549_v56 = vsub.f32 %v2337_v52, %v2504_v9 }
 0x193   :  { %v986_v37 = vmul.f32 %v2527_v14, %v2527_v14  ;;  %v987_v49 = vmul.f32 %v2531_v41, %v2531_v41  ;;  %v988_v54 = vmul.f32 %v2537_v40, %v2537_v40  ;;  %v2555_v12 = vsub.f32 %v2348_v59, %v2504_v9 }
 0x194   :  { %v1047_v27 = vadd.f32 %v984_v17, %v983_v31  ;;  %v989_v47 = vmul.f32 %v2543_v43, %v2543_v43  ;;  %v2561_v17 = vsub.f32 %v2356_v0, %v2504_v9  ;;  %v990_v52 = vmul.f32 %v2549_v56, %v2549_v56 }
 0x195   :  { %v991_v59 = vmul.f32 %v2555_v12, %v2555_v12 }
 0x196   :  { %v1048_v34 = vadd.f32 %v1047_v27, %v985_v44  ;;  %v2567_v27 = vsub.f32 %v2345_v57, %v2504_v9  ;;  %v992_v0 = vmul.f32 %v2561_v17, %v2561_v17 }
 0x198   :  { %v1049_v51 = vadd.f32 %v1048_v34, %v986_v37  ;;  %v2573_v34 = vsub.f32 %v2353_v62, %v2504_v9  ;;  %v993_v57 = vmul.f32 %v2567_v27, %v2567_v27 }
 0x19a   :  { %v1050_v4 = vadd.f32 %v1049_v51, %v987_v49  ;;  %v2579_v51 = vsub.f32 %v2364_v5, %v2504_v9  ;;  %v994_v62 = vmul.f32 %v2573_v34, %v2573_v34 }
 0x19c   :  { %v1051_v31 = vadd.f32 %v1050_v4, %v988_v54  ;;  %v2585_v4 = vsub.f32 %v2372_v10, %v2504_v9  ;;  %v995_v5 = vmul.f32 %v2579_v51, %v2579_v51 }
 0x19e   :  { %v1052_v44 = vadd.f32 %v1051_v31, %v989_v47  ;;  %v2591_v31 = vsub.f32 %v2361_v3, %v2504_v9  ;;  %v996_v10 = vmul.f32 %v2585_v4, %v2585_v4 }
 0x1a0   :  { %v1053_v37 = vadd.f32 %v1052_v44, %v990_v52  ;;  %v2597_v44 = vsub.f32 %v2369_v8, %v2504_v9  ;;  %v997_v3 = vmul.f32 %v2591_v31, %v2591_v31 }
 0x1a2   :  { %v1054_v49 = vadd.f32 %v1053_v37, %v991_v59  ;;  %v2603_v37 = vsub.f32 %v2380_v15, %v2504_v9  ;;  %v998_v8 = vmul.f32 %v2597_v44, %v2597_v44 }
 0x1a4   :  { %v1055_v54 = vadd.f32 %v1054_v49, %v992_v0  ;;  %v2609_v49 = vsub.f32 %v2388_v20, %v2504_v9  ;;  %v999_v15 = vmul.f32 %v2603_v37, %v2603_v37 }
 0x1a6   :  { %v1056_v47 = vadd.f32 %v1055_v54, %v993_v57  ;;  %v2615_v54 = vsub.f32 %v2377_v13, %v2504_v9  ;;  %v1000_v20 = vmul.f32 %v2609_v49, %v2609_v49 }
 0x1a8   :  { %v1057_v52 = vadd.f32 %v1056_v47, %v994_v62  ;;  %v2621_v47 = vsub.f32 %v2385_v18, %v2504_v9  ;;  %v1001_v13 = vmul.f32 %v2615_v54, %v2615_v54 }
 0x1aa   :  { %v1058_v59 = vadd.f32 %v1057_v52, %v995_v5  ;;  %v2627_v52 = vsub.f32 %v2396_v25, %v2504_v9  ;;  %v1002_v18 = vmul.f32 %v2621_v47, %v2621_v47 }
 0x1ac   :  { %v1059_v0 = vadd.f32 %v1058_v59, %v996_v10  ;;  %v2633_v59 = vsub.f32 %v2404_v30, %v2504_v9  ;;  %v1003_v25 = vmul.f32 %v2627_v52, %v2627_v52 }
 0x1ae   :  { %v1060_v57 = vadd.f32 %v1059_v0, %v997_v3  ;;  %v2639_v0 = vsub.f32 %v2393_v23, %v2504_v9  ;;  %v1004_v30 = vmul.f32 %v2633_v59, %v2633_v59 }
 0x1b0   :  { %v1061_v62 = vadd.f32 %v1060_v57, %v998_v8  ;;  %v2645_v57 = vsub.f32 %v2401_v28, %v2504_v9  ;;  %v1005_v23 = vmul.f32 %v2639_v0, %v2639_v0 }
 0x1b2   :  { %v1062_v5 = vadd.f32 %v1061_v62, %v999_v15  ;;  %v2651_v62 = vsub.f32 %v2412_v35, %v2504_v9  ;;  %v1006_v28 = vmul.f32 %v2645_v57, %v2645_v57 }
 0x1b4   :  { %v1063_v10 = vadd.f32 %v1062_v5, %v1000_v20  ;;  %v2657_v5 = vsub.f32 %v2420_v46, %v2504_v9  ;;  %v1007_v35 = vmul.f32 %v2651_v62, %v2651_v62 }
 0x1b6   :  { %v1064_v3 = vadd.f32 %v1063_v10, %v1001_v13  ;;  %v2663_v10 = vsub.f32 %v2409_v33, %v2504_v9  ;;  %v1008_v46 = vmul.f32 %v2657_v5, %v2657_v5 }
 0x1b8   :  { %v1065_v8 = vadd.f32 %v1064_v3, %v1002_v18  ;;  %v2669_v3 = vsub.f32 %v2417_v38, %v2504_v9  ;;  %v1009_v33 = vmul.f32 %v2663_v10, %v2663_v10 }
 0x1ba   :  { %v1066_v15 = vadd.f32 %v1065_v8, %v1003_v25  ;;  %v2675_v8 = vsub.f32 %v2428_v58, %v2504_v9  ;;  %v1010_v38 = vmul.f32 %v2669_v3, %v2669_v3 }
 0x1bc   :  { %v1067_v20 = vadd.f32 %v1066_v15, %v1004_v30  ;;  %v2681_v15 = vsub.f32 %v2436_v7, %v2504_v9  ;;  %v1011_v58 = vmul.f32 %v2675_v8, %v2675_v8 }
 0x1be   :  { %v1068_v13 = vadd.f32 %v1067_v20, %v1005_v23  ;;  %v2687_v20 = vsub.f32 %v2425_v53, %v2504_v9  ;;  %v1012_v7 = vmul.f32 %v2681_v15, %v2681_v15 }
 0x1c0   :  { %v1069_v18 = vadd.f32 %v1068_v13, %v1006_v28  ;;  %v2693_v13 = vsub.f32 %v2433_v2, %v2504_v9  ;;  %v1013_v53 = vmul.f32 %v2687_v20, %v2687_v20 }
 0x1c2   :  { %v1070_v25 = vadd.f32 %v1069_v18, %v1007_v35  ;;  %v2699_v18 = vsub.f32 %v2325_v45, %v2504_v9  ;;  %v1014_v2 = vmul.f32 %v2693_v13, %v2693_v13 }
 0x1c4   :  { %v1071_v30 = vadd.f32 %v1070_v25, %v1008_v46  ;;  %v2705_v25 = vsub.f32 %v2342_v55, %v2504_v9  ;;  %v1015_v45 = vmul.f32 %v2699_v18, %v2699_v18 }
 0x1c6   :  { %v1072_v23 = vadd.f32 %v1071_v30, %v1009_v33  ;;  %v2711_v30 = vsub.f32 %v2319_v42, %v2504_v9  ;;  %v1016_v55 = vmul.f32 %v2705_v25, %v2705_v25 }
 0x1c8   :  { %v1073_v28 = vadd.f32 %v1072_v23, %v1010_v38  ;;  %v2717_v23 = vsub.f32 %v2334_v50, %v2504_v9  ;;  %v1017_v42 = vmul.f32 %v2711_v30, %v2711_v30 }
 0x1ca   :  { %v1074_v35 = vadd.f32 %v1073_v28, %v1011_v58  ;;  %v2723_v28 = vsub.f32 %v2358_v1, %v2504_v9  ;;  %v1018_v50 = vmul.f32 %v2717_v23, %v2717_v23 }
 0x1cc   :  { %v1075_v46 = vadd.f32 %v1074_v35, %v1012_v7  ;;  %v2729_v35 = vsub.f32 %v2374_v11, %v2504_v9  ;;  %v1019_v1 = vmul.f32 %v2723_v28, %v2723_v28 }
 0x1ce   :  { %v1076_v33 = vadd.f32 %v1075_v46, %v1013_v53  ;;  %v2735_v46 = vsub.f32 %v2350_v60, %v2504_v9  ;;  %v1020_v11 = vmul.f32 %v2729_v35, %v2729_v35 }
 0x1d0   :  { %v1077_v38 = vadd.f32 %v1076_v33, %v1014_v2  ;;  %3405 = vst [vmem:[#allocation25_spill] sm:$0xff] %v2735_v46  ;;  %v3406_v33 = vld [vmem:[#allocation11_spill] sm:$0xff]  ;;  %v1021_v60 = vmul.f32 %v2735_v46, %v2735_v46 }
 0x1d2   :  { %v1078_v58 = vadd.f32 %v1077_v38, %v1015_v45  ;;  %v2741_v45 = vsub.f32 %v3406_v33, %v2504_v9  ;;  %v2759_v33 = vsub.f32 %v2382_v16, %v2504_v9 }
 0x1d4   :  { %v1079_v7 = vadd.f32 %v1078_v58, %v1016_v55  ;;  %v2747_v55 = vsub.f32 %v2390_v21, %v2504_v9  ;;  %v1025_v16 = vmul.f32 %v2759_v33, %v2759_v33 }
 0x1d6   :  { %v1080_v53 = vadd.f32 %v1079_v7, %v1017_v42  ;;  %3407 = vst [vmem:[#allocation11_spill] sm:$0xff] %v2747_v55  ;;  %v3408_v42 = vld [vmem:[#allocation13_spill] sm:$0xff]  ;;  %v1023_v21 = vmul.f32 %v2747_v55, %v2747_v55 }
 0x1d7   :  { %v2753_v7 = vsub.f32 %v3408_v42, %v2504_v9  ;;  %3409 = vst [vmem:[#allocation13_spill] sm:$0xff] %v2759_v33  ;;  %v2771_v42 = vsub.f32 %v2422_v48, %v2504_v9 }
 0x1d8   :  { %v1081_v2 = vadd.f32 %v1080_v53, %v1018_v50  ;;  %v1022_v50 = vmul.f32 %v2741_v45, %v2741_v45 }
 0x1d9   :  { %v1027_v48 = vmul.f32 %v2771_v42, %v2771_v42 }
 0x1da   :  { %v1082_v38 = vadd.f32 %v1081_v2, %v1019_v1  ;;  %v3410_v2 = vld [vmem:[#allocation12_spill] sm:$0xff] }
 0x1db   :  { %v2765_v46 = vsub.f32 %v3410_v2, %v2504_v9  ;;  %3411 = vst [vmem:[#allocation12_spill] sm:$0xff] %v2771_v42  ;;  %v2783_v2 = vsub.f32 %v2414_v36, %v2504_v9 }
 0x1dc   :  { %v1083_v58 = vadd.f32 %v1082_v38, %v1020_v11  ;;  %v1024_v11 = vmul.f32 %v2753_v7, %v2753_v7 }
 0x1dd   :  { %3414 = vst [vmem:[#allocation26_spill] sm:$0xff] %v2783_v2  ;;  %v1029_v36 = vmul.f32 %v2783_v2, %v2783_v2 }
 0x1de   :  { %v1084_v53 = vadd.f32 %v1083_v58, %v1021_v60  ;;  %v3412_v58 = vld [vmem:[#allocation15_spill] sm:$0xff] }
 0x1df   :  { %v2777_v55 = vsub.f32 %v3412_v58, %v2504_v9  ;;  %v2795_v58 = vsub.f32 %v2446_v24, %v2504_v9 }
 0x1e0   :  { %v1085_v1 = vadd.f32 %v1084_v53, %v1022_v50  ;;  %v1026_v50 = vmul.f32 %v2765_v46, %v2765_v46 }
 0x1e1   :  { %3413 = vst [vmem:[#allocation15_spill] sm:$0xff] %v2777_v55  ;;  %3417 = vst [vmem:[#allocation27_spill] sm:$0xff] %v2795_v58  ;;  %v1031_v24 = vmul.f32 %v2795_v58, %v2795_v58 }
 0x1e2   :  { %v1086_v38 = vadd.f32 %v1085_v1, %v1023_v21  ;;  %v3415_v1 = vld [vmem:[#allocation14_spill] sm:$0xff] }
 0x1e3   :  { %v2789_v33 = vsub.f32 %v3415_v1, %v2504_v9  ;;  %v3420_v1 = vld [vmem:[#allocation16_spill] sm:$0xff] }
 0x1e4   :  { %v1087_v60 = vadd.f32 %v1086_v38, %v1024_v11  ;;  %v1028_v11 = vmul.f32 %v2777_v55, %v2777_v55  ;;  %v2807_v55 = vsub.f32 %v3420_v1, %v2504_v9  ;;  %v3426_v1 = vld [vmem:[#allocation22_spill] sm:$0xff] }
 0x1e5   :  { %3416 = vst [vmem:[#allocation14_spill] sm:$0xff] %v2789_v33  ;;  %v2825_v58 = vsub.f32 %v3426_v1, %v2504_v9  ;;  %v3431_v1 = vld [vmem:[#allocation23_spill] sm:$0xff] }
 0x1e6   :  { %v1088_v53 = vadd.f32 %v1087_v60, %v1025_v16  ;;  %v3418_v60 = vld [vmem:[#allocation18_spill] sm:$0xff]  ;;  %3421 = vst [vmem:[#allocation16_spill] sm:$0xff] %v2807_v55 }
 0x1e7   :  { %v2801_v42 = vsub.f32 %v3418_v60, %v2504_v9  ;;  %v3424_v60 = vld [vmem:[#allocation20_spill] sm:$0xff] }
 0x1e8   :  { %v1089_v21 = vadd.f32 %v1088_v53, %v1026_v50  ;;  %v1030_v50 = vmul.f32 %v2789_v33, %v2789_v33  ;;  %v2819_v33 = vsub.f32 %v3424_v60, %v2504_v9  ;;  %v3429_v60 = vld [vmem:[#allocation21_spill] sm:$0xff] }
 0x1e9   :  { %3419 = vst [vmem:[#allocation18_spill] sm:$0xff] %v2801_v42 }
 0x1ea   :  { %v1090_v38 = vadd.f32 %v1089_v21, %v1027_v48  ;;  %v3422_v21 = vld [vmem:[#allocation17_spill] sm:$0xff]  ;;  %3425 = vst [vmem:[#allocation20_spill] sm:$0xff] %v2819_v33 }
 0x1eb   :  { %v2813_v2 = vsub.f32 %v3422_v21, %v2504_v9  ;;  %v3427_v21 = vld [vmem:[#allocation19_spill] sm:$0xff] }
 0x1ec   :  { %v1091_v16 = vadd.f32 %v1090_v38, %v1028_v11  ;;  %v1032_v11 = vmul.f32 %v2801_v42, %v2801_v42  ;;  %v2831_v42 = vsub.f32 %v3427_v21, %v2504_v9  ;;  %v3433_v21 = vld [vmem:[#allocation24_spill] sm:$0xff] }
 0x1ed   :  { %3423 = vst [vmem:[#allocation17_spill] sm:$0xff] %v2813_v2 }
 0x1ee   :  { %v1092_v53 = vadd.f32 %v1091_v16, %v1029_v36  ;;  %v1033_v36 = vmul.f32 %v2807_v55, %v2807_v55  ;;  %3428 = vst [vmem:[#allocation22_spill] sm:$0xff] %v2831_v42  ;;  %v2837_v55 = vsub.f32 %v3429_v60, %v2504_v9  ;;  %v2855_v60 = vsub.f32 %v2474_v6, %v2504_v9 }
 0x1f0   :  { %v1093_v48 = vadd.f32 %v1092_v53, %v1030_v50  ;;  %v1034_v50 = vmul.f32 %v2813_v2, %v2813_v2  ;;  %3430 = vst [vmem:[#allocation19_spill] sm:$0xff] %v2837_v55  ;;  %v2843_v2 = vsub.f32 %v3431_v1, %v2504_v9  ;;  %3435 = vst [vmem:[#allocation24_spill] sm:$0xff] %v2855_v60 }
 0x1f1   :  { %v2861_v1 = vsub.f32 %v2482_v26, %v2504_v9 }
 0x1f2   :  { %v1094_v38 = vadd.f32 %v1093_v48, %v1031_v24  ;;  %v1035_v24 = vmul.f32 %v2819_v33, %v2819_v33  ;;  %3432 = vst [vmem:[#allocation21_spill] sm:$0xff] %v2843_v2  ;;  %v2849_v33 = vsub.f32 %v3433_v21, %v2504_v9  ;;  %v915_v21 = vsub.f32 %v2494_v39, %v2504_v9 }
 0x1f3   :  { %3436 = vst [vmem:[#allocation28_spill] sm:$0xff] %v2861_v1  ;;  %v1044_v39 = vmul.f32 %v2507_v19, %v2507_v19 }
 0x1f4   :  { %v1095_v16 = vadd.f32 %v1094_v38, %v1032_v11  ;;  %v1036_v11 = vmul.f32 %v2825_v58, %v2825_v58  ;;  %3434 = vst [vmem:[#allocation23_spill] sm:$0xff] %v2849_v33  ;;  %v1043_v26 = vmul.f32 %v915_v21, %v915_v21 }
 0x1f6   :  { %v1096_v53 = vadd.f32 %v1095_v16, %v1033_v36  ;;  %v1037_v36 = vmul.f32 %v2831_v42, %v2831_v42  ;;  %v1122_v42 = vlaneseq }
 0x1f8   :  { %v1097_v48 = vadd.f32 %v1096_v53, %v1034_v50  ;;  %v1038_v50 = vmul.f32 %v2837_v55, %v2837_v55 }
 0x1fa   :  { %v1098_v38 = vadd.f32 %v1097_v48, %v1035_v24  ;;  %v1039_v24 = vmul.f32 %v2843_v2, %v2843_v2 }
 0x1fc   :  { %v1099_v16 = vadd.f32 %v1098_v38, %v1036_v11  ;;  %v1040_v11 = vmul.f32 %v2849_v33, %v2849_v33 }
 0x1fe   :  { %v1100_v53 = vadd.f32 %v1099_v16, %v1037_v36  ;;  %v1041_v36 = vmul.f32 %v2855_v60, %v2855_v60  ;;  %v1042_v16 = vmul.f32 %v2861_v1, %v2861_v1 }
 0x200   :  { %v1101_v48 = vadd.f32 %v1100_v53, %v1038_v50  ;;  %v2873_v50 = vsub.f32 %v2490_v61, %v2504_v9 }
 0x202   :  { %v1102_v38 = vadd.f32 %v1101_v48, %v1039_v24  ;;  %v2877_v24 = vsub.f32 %v2498_v32, %v2504_v9 }
 0x204   :  { %v1103_v6 = vadd.f32 %v1102_v38, %v1040_v11  ;;  %3437 = vst [vmem:[#allocation29_spill] sm:$0xff] %v2877_v24  ;;  %v1045_v11 = vmul.f32 %v2873_v50, %v2873_v50 }
 0x206   :  { %v1104_v2 = vadd.f32 %v1103_v6, %v1041_v36  ;;  %v1046_v36 = vmul.f32 %v2877_v24, %v2877_v24 }
 0x208   :  { %v1105_v53 = vadd.f32 %v1104_v2, %v1042_v16 }
 0x20a   :  { %v1106_v48 = vadd.f32 %v1105_v53, %v1043_v26  ;;  %v1123_v26 = vshrl.u32 %v1122_v42, 7  ;;  %v1117_v53 = vld [vmem:[%s3355_s2] sm:$0x1]  ;;  %s2277_s2 = smov [#allocation7]  }
 0x20c   :  { %v1107_v38 = vadd.f32 %v1106_v48, %v1044_v39  ;;  %v1124_v39 = vsub.s32 0, %v1123_v26  ;;  %v3446_v26 = vld [vmem:[#allocation11_spill] sm:$0xff] }
 0x20e   :  { %v1108_v6 = vadd.f32 %v1107_v38, %v1045_v11 }
 0x210   :  { %v1109_v61 = vadd.f32 %v1108_v6, %v1046_v36 }
 0x212   :  { %v1110_v1 = vrot.slane %v1109_v61, 4 }
 0x214   :  { %v1111_v60 = vadd.f32 %v1110_v1, %v1109_v61 }
 0x216   :  { %v1112_v2 = vrot.slane %v1111_v60, 2 }
 0x218   :  { %v1113_v16 = vadd.f32 %v1112_v2, %v1111_v60  ;;  %v2893_v60 = vld [vmem:[%s3356_s3] ss:$0 sm:$0xff]  ;;  %s1651_s3 = sshll.u32 %s2277_s2, 4  ;;  %s1652_s3 = int_to_ptr.vmem [resolvable:$true] %s1651_s3 }
 0x219   :  { %s2247_s29 = scalar_lea.vmem %s1652_s3, 4096  ;;  %p2252_p11 = scmp.lt.s32.totalorder %s1652_s3, %s1652_s3 }
 0x21a   :  { %v1114_v33 = vrot.slane %v1113_v16, 1  ;;  %p2248_p10 = scmp.ne.s32.totalorder %s1652_s3, %s2247_s29  ;;  %p2253_p12 = scmp.lt.s32.totalorder %s2247_s29, %s2247_s29 }
 0x21c   :  { %v1115_v9 = vadd.f32 %v1114_v33, %v1113_v16  ;;  %p2254_p13 = por %p2253_p12, %p2252_p11 }
 0x21e   :  { %v1116_v32 = vmul.f32 0.001953125, %v1115_v9  ;;  %p2255_p0 = pnand %p2254_p13, %p2248_p10 }
 0x220   :  { %v1118_v55 = vadd.f32 1e-05, %v1116_v32  ;;  %v3445_v32 = vld [vmem:[#allocation25_spill] sm:$0xff] }
 0x222   :  { %2205 = vrsqrt.f32 %v1118_v55 }
 0x22f   :  { %v2206_v48 = vpop.eup %2205 }
 0x230   :  { %v1120_v24 = vmul.f32 %v2206_v48, %v1117_v53  ;;  %v3447_v53 = vld [vmem:[#allocation13_spill] sm:$0xff]  ;;  %v3449_v48 = vld [vmem:[#allocation15_spill] sm:$0xff] }
 0x232   :  { %v2888_v11 = vrot.slane %v1120_v24, %v1124_v39  ;;  %v3448_v39 = vld [vmem:[#allocation12_spill] sm:$0xff] }
 0x234   :  { %v1187_v33 = vmul.f32 %v2888_v11, %v915_v21  ;;  %v1188_v55 = vmul.f32 %v2888_v11, %v2507_v19  ;;  %v2900_v42 = vmul.f32 %v2888_v11, %v2511_v22  ;;  %v2904_v1 = vmul.f32 %v2888_v11, %v2515_v29 }
 0x235   :  { %v2908_v24 = vmul.f32 %v2888_v11, %v2519_v63  ;;  %v2912_v38 = vmul.f32 %v2888_v11, %v2527_v14  ;;  %v2916_v21 = vmul.f32 %v2888_v11, %v2531_v41  ;;  %v2920_v19 = vmul.f32 %v2888_v11, %v2537_v40 }
 0x236   :  { %v1258_v22 = vadd.f32 %v2893_v60, %v1187_v33  ;;  %v1259_v29 = vadd.f32 %v2893_v60, %v1188_v55  ;;  %v2926_v63 = vmul.f32 %v2888_v11, %v2543_v43  ;;  %v2930_v14 = vmul.f32 %v2888_v11, %v2549_v56  ;;  %v3450_v55 = vld [vmem:[#allocation26_spill] sm:$0xff] }
 0x237   :  { %v2934_v41 = vmul.f32 %v2888_v11, %v2555_v12  ;;  %v2938_v40 = vmul.f32 %v2888_v11, %v2561_v17  ;;  %v2942_v36 = vmul.f32 %v2888_v11, %v2567_v27  ;;  %v2946_v43 = vmul.f32 %v2888_v11, %v2573_v34 }
 0x238   :  { %v1322_v6 = vmax.f32 %v1258_v22, 0.0  ;;  %v1323_v61 = vmax.f32 %v1259_v29, 0.0  ;;  %v2950_v56 = vmul.f32 %v2888_v11, %v2579_v51  ;;  %v2954_v12 = vmul.f32 %v2888_v11, %v2585_v4  ;;  %v3451_v22 = vld [vmem:[#allocation14_spill] sm:$0xff] }
 0x239   :  { %v2958_v17 = vmul.f32 %v2888_v11, %v2591_v31  ;;  %v2962_v27 = vmul.f32 %v2888_v11, %v2597_v44  ;;  %v2966_v34 = vmul.f32 %v2888_v11, %v2603_v37  ;;  %v2970_v51 = vmul.f32 %v2888_v11, %v2609_v49 }
 0x23a   :  { %v1986_v2 = vpack.c.bf16 %v1323_v61, %v1322_v6  ;;  %v2974_v4 = vmul.f32 %v2888_v11, %v2615_v54  ;;  %v2978_v31 = vmul.f32 %v2888_v11, %v2621_v47  ;;  %v2982_v44 = vmul.f32 %v2888_v11, %v2627_v52  ;;  %v3452_v6 = vld [vmem:[#allocation27_spill] sm:$0xff]  ;;  %v3453_v61 = vld [vmem:[#allocation18_spill] sm:$0xff] }
 0x23b   :  { %v2986_v37 = vmul.f32 %v2888_v11, %v2633_v59  ;;  %v2990_v49 = vmul.f32 %v2888_v11, %v2639_v0  ;;  %v2994_v54 = vmul.f32 %v2888_v11, %v2645_v57  ;;  %v2998_v47 = vmul.f32 %v2888_v11, %v2651_v62 }
 0x23c   :  { %3438 = vst [vmem:[#allocation30_spill] sm:$0xff] %v2974_v4  ;;  %3439 = vst [vmem:[#allocation31_spill] sm:$0xff] %v2978_v31  ;;  %v1152_v52 = vmul.f32 %v2888_v11, %v2657_v5  ;;  %v1153_v59 = vmul.f32 %v2888_v11, %v2663_v10  ;;  %v1154_v16 = vmul.f32 %v2888_v11, %v2669_v3  ;;  %v3462_v31 = vld [vmem:[#allocation28_spill] sm:$0xff]  ;;  %v3463_v4 = vld [vmem:[#allocation29_spill] sm:$0xff] }
 0x23d   :  { %3440 = vst [vmem:[#allocation32_spill] sm:$0xff] %v2982_v44  ;;  %3441 = vst [vmem:[#allocation33_spill] sm:$0xff] %v2986_v37  ;;  %v1155_v0 = vmul.f32 %v2888_v11, %v2675_v8  ;;  %v1156_v57 = vmul.f32 %v2888_v11, %v2681_v15  ;;  %v1157_v62 = vmul.f32 %v2888_v11, %v2687_v20  ;;  %v3460_v37 = vld [vmem:[#allocation23_spill] sm:$0xff]  ;;  %v3461_v44 = vld [vmem:[#allocation24_spill] sm:$0xff] }
 0x23e   :  { %3442 = vst [vmem:[#allocation34_spill] sm:$0xff] %v2990_v49  ;;  %3443 = vst [vmem:[#allocation35_spill] sm:$0xff] %v2994_v54  ;;  %v1158_v9 = vmul.f32 %v2888_v11, %v2693_v13  ;;  %v1159_v5 = vmul.f32 %v2888_v11, %v2699_v18  ;;  %v1160_v10 = vmul.f32 %v2888_v11, %v2705_v25  ;;  %v3458_v54 = vld [vmem:[#allocation19_spill] sm:$0xff]  ;;  %v3459_v49 = vld [vmem:[#allocation21_spill] sm:$0xff] }
 0x23f   :  { %3444 = vst [vmem:[#allocation36_spill] sm:$0xff] %v2998_v47  ;;  %2022 = vst [vmem:[#allocation7 + $0xf0] sm:$0xff] %v1986_v2   ;;  %v1161_v3 = vmul.f32 %v2888_v11, %v2711_v30  ;;  %v1162_v8 = vmul.f32 %v2888_v11, %v2717_v23  ;;  %v1163_v15 = vmul.f32 %v2888_v11, %v2723_v28  ;;  %v3457_v47 = vld [vmem:[#allocation22_spill] sm:$0xff] }
 0x240   :  { %v1164_v20 = vmul.f32 %v2888_v11, %v2729_v35  ;;  %v1165_v13 = vmul.f32 %v2888_v11, %v3445_v32  ;;  %v1166_v18 = vmul.f32 %v2888_v11, %v2741_v45  ;;  %v1167_v25 = vmul.f32 %v2888_v11, %v3446_v26  ;;  %v3454_v32 = vld [vmem:[#allocation16_spill] sm:$0xff]  ;;  %v3455_v26 = vld [vmem:[#allocation17_spill] sm:$0xff] }
 0x241   :  { %v1168_v30 = vmul.f32 %v2888_v11, %v2753_v7  ;;  %v1169_v23 = vmul.f32 %v2888_v11, %v3447_v53  ;;  %v1170_v28 = vmul.f32 %v2888_v11, %v2765_v46  ;;  %v1171_v35 = vmul.f32 %v2888_v11, %v3448_v39  ;;  %v3456_v39 = vld [vmem:[#allocation20_spill] sm:$0xff] }
 0x242   :  { %v1172_v33 = vmul.f32 %v2888_v11, %v3449_v48  ;;  %v1173_v45 = vmul.f32 %v2888_v11, %v3450_v55  ;;  %v1174_v29 = vmul.f32 %v2888_v11, %v3451_v22  ;;  %v1175_v7 = vmul.f32 %v2888_v11, %v3452_v6 }
 0x243   :  { %v1176_v2 = vmul.f32 %v2888_v11, %v3453_v61  ;;  %v1177_v46 = vmul.f32 %v2888_v11, %v3454_v32  ;;  %v1178_v53 = vmul.f32 %v2888_v11, %v3455_v26  ;;  %v1179_v48 = vmul.f32 %v2888_v11, %v3456_v39 }
 0x244   :  { %v1180_v55 = vmul.f32 %v2888_v11, %v2825_v58  ;;  %v1181_v22 = vmul.f32 %v2888_v11, %v3457_v47  ;;  %v1182_v6 = vmul.f32 %v2888_v11, %v3458_v54  ;;  %v1183_v61 = vmul.f32 %v2888_v11, %v3459_v49 }
 0x245   :  { %v1184_v32 = vmul.f32 %v2888_v11, %v3460_v37  ;;  %v1185_v26 = vmul.f32 %v2888_v11, %v3461_v44  ;;  %v1186_v39 = vmul.f32 %v2888_v11, %v3462_v31  ;;  %v1189_v58 = vmul.f32 %v2888_v11, %v2873_v50  ;;  %v3471_v37 = vld [vmem:[#allocation32_spill] sm:$0xff] }
 0x246   :  { %v1190_v47 = vmul.f32 %v2888_v11, %v3463_v4  ;;  %v3076_v54 = vadd.f32 %v2893_v60, %v2900_v42  ;;  %v3080_v49 = vadd.f32 %v2893_v60, %v2904_v1  ;;  %v3084_v44 = vadd.f32 %v2893_v60, %v2908_v24  ;;  %v3469_v4 = vld [vmem:[#allocation31_spill] sm:$0xff] }
 0x247   :  { %v3088_v31 = vadd.f32 %v2893_v60, %v2912_v38  ;;  %v3092_v50 = vadd.f32 %v2893_v60, %v2916_v21  ;;  %v3096_v11 = vadd.f32 %v2893_v60, %v2920_v19  ;;  %v3100_v42 = vadd.f32 %v2893_v60, %v2926_v63 }
 0x248   :  { %v3104_v1 = vadd.f32 %v2893_v60, %v2930_v14  ;;  %v3108_v24 = vadd.f32 %v2893_v60, %v2934_v41  ;;  %v3112_v38 = vadd.f32 %v2893_v60, %v2938_v40  ;;  %v3116_v21 = vadd.f32 %v2893_v60, %v2942_v36 }
 0x249   :  { %v3120_v19 = vadd.f32 %v2893_v60, %v2946_v43  ;;  %v3124_v63 = vadd.f32 %v2893_v60, %v2950_v56  ;;  %v3128_v14 = vadd.f32 %v2893_v60, %v2954_v12  ;;  %v3132_v41 = vadd.f32 %v2893_v60, %v2958_v17  ;;  %v3467_v56 = vld [vmem:[#allocation30_spill] sm:$0xff] }
 0x24a   :  { %v3136_v40 = vadd.f32 %v2893_v60, %v2962_v27  ;;  %v3140_v36 = vadd.f32 %v2893_v60, %v2966_v34  ;;  %v3144_v43 = vadd.f32 %v2893_v60, %v2970_v51  ;;  %v3148_v12 = vadd.f32 %v2893_v60, %v3467_v56 }
 0x24b   :  { %v3152_v17 = vadd.f32 %v2893_v60, %v3469_v4  ;;  %v3156_v27 = vadd.f32 %v2893_v60, %v3471_v37  ;;  %v3178_v37 = vadd.f32 %v2893_v60, %v1153_v59  ;;  %v3199_v59 = vadd.f32 %v2893_v60, %v1160_v10 }
 0x24c   :  { %3464 = vst [vmem:[#allocation25_spill] sm:$0xff] %v3136_v40  ;;  %3465 = vst [vmem:[#allocation11_spill] sm:$0xff] %v3140_v36  ;;  %v3472_v40 = vld [vmem:[#allocation33_spill] sm:$0xff]  ;;  %v3473_v36 = vld [vmem:[#allocation34_spill] sm:$0xff]  ;;  %v3220_v10 = vadd.f32 %v2893_v60, %v1167_v25  ;;  %v3241_v25 = vadd.f32 %v2893_v60, %v1174_v29  ;;  %v3262_v29 = vadd.f32 %v2893_v60, %v1181_v22 }
 0x24d   :  { %3466 = vst [vmem:[#allocation13_spill] sm:$0xff] %v3144_v43  ;;  %3468 = vst [vmem:[#allocation12_spill] sm:$0xff] %v3148_v12  ;;  %v3160_v34 = vadd.f32 %v2893_v60, %v3472_v40  ;;  %v3164_v51 = vadd.f32 %v2893_v60, %v3473_v36  ;;  %v3475_v43 = vld [vmem:[#allocation35_spill] sm:$0xff]  ;;  %v3476_v12 = vld [vmem:[#allocation36_spill] sm:$0xff]  ;;  %v3181_v40 = vadd.f32 %v2893_v60, %v1154_v16 }
 0x24e   :  { %3470 = vst [vmem:[#allocation15_spill] sm:$0xff] %v3152_v17  ;;  %v3168_v56 = vadd.f32 %v2893_v60, %v3475_v43  ;;  %v3172_v4 = vadd.f32 %v2893_v60, %v3476_v12  ;;  %v3175_v17 = vadd.f32 %v2893_v60, %v1152_v52  ;;  %v3184_v36 = vadd.f32 %v2893_v60, %v1155_v0 }
 0x24f   :  { %3474 = vst [vmem:[#allocation26_spill] sm:$0xff] %v3164_v51  ;;  %v3187_v51 = vadd.f32 %v2893_v60, %v1156_v57  ;;  %v3190_v43 = vadd.f32 %v2893_v60, %v1157_v62  ;;  %v3193_v12 = vadd.f32 %v2893_v60, %v1158_v9  ;;  %v3196_v52 = vadd.f32 %v2893_v60, %v1159_v5 }
 0x250   :  { %v3202_v16 = vadd.f32 %v2893_v60, %v1161_v3  ;;  %v3205_v0 = vadd.f32 %v2893_v60, %v1162_v8  ;;  %v3208_v57 = vadd.f32 %v2893_v60, %v1163_v15  ;;  %v3211_v62 = vadd.f32 %v2893_v60, %v1164_v20  ;;  %3477 = vst [vmem:[#allocation14_spill] sm:$0xff] %v3262_v29 }
 0x251   :  { %v3214_v9 = vadd.f32 %v2893_v60, %v1165_v13  ;;  %v3217_v5 = vadd.f32 %v2893_v60, %v1166_v18  ;;  %v3223_v3 = vadd.f32 %v2893_v60, %v1168_v30  ;;  %v3226_v8 = vadd.f32 %v2893_v60, %v1169_v23 }
 0x252   :  { %v3229_v15 = vadd.f32 %v2893_v60, %v1170_v28  ;;  %v3232_v20 = vadd.f32 %v2893_v60, %v1171_v35  ;;  %v3235_v13 = vadd.f32 %v2893_v60, %v1172_v33  ;;  %v3238_v18 = vadd.f32 %v2893_v60, %v1173_v45 }
 0x253   :  { %v3244_v30 = vadd.f32 %v2893_v60, %v1175_v7  ;;  %v3247_v23 = vadd.f32 %v2893_v60, %v1176_v2  ;;  %v3250_v28 = vadd.f32 %v2893_v60, %v1177_v46  ;;  %v3253_v35 = vadd.f32 %v2893_v60, %v1178_v53 }
 0x254   :  { %v3256_v33 = vadd.f32 %v2893_v60, %v1179_v48  ;;  %v3259_v45 = vadd.f32 %v2893_v60, %v1180_v55  ;;  %v3265_v7 = vadd.f32 %v2893_v60, %v1182_v6  ;;  %v3268_v2 = vadd.f32 %v2893_v60, %v1183_v61 }
 0x255   :  { %v3271_v46 = vadd.f32 %v2893_v60, %v1184_v32  ;;  %v3274_v53 = vadd.f32 %v2893_v60, %v1185_v26  ;;  %v3277_v48 = vadd.f32 %v2893_v60, %v1186_v39  ;;  %v3280_v55 = vadd.f32 %v2893_v60, %v1189_v58 }
 0x256   :  { %3478 = vst [vmem:[#allocation27_spill] sm:$0xff] %v3265_v7  ;;  %3479 = vst [vmem:[#allocation18_spill] sm:$0xff] %v3268_v2  ;;  %v3283_v22 = vadd.f32 %v2893_v60, %v1190_v47  ;;  %v1262_v6 = vmax.f32 %v3076_v54, 0.0  ;;  %v1263_v61 = vmax.f32 %v3080_v49, 0.0  ;;  %v1264_v2 = vmax.f32 %v3084_v44, 0.0  ;;  %v3489_v7 = vld [vmem:[#allocation15_spill] sm:$0xff] }
 0x257   :  { %3480 = vst [vmem:[#allocation16_spill] sm:$0xff] %v3271_v46  ;;  %3481 = vst [vmem:[#allocation17_spill] sm:$0xff] %v3274_v53  ;;  %v1265_v32 = vmax.f32 %v3088_v31, 0.0  ;;  %v1266_v26 = vmax.f32 %v3092_v50, 0.0  ;;  %v1267_v53 = vmax.f32 %v3096_v11, 0.0  ;;  %v1268_v39 = vmax.f32 %v3100_v42, 0.0 }
 0x258   :  { %3482 = vst [vmem:[#allocation20_spill] sm:$0xff] %v3277_v48  ;;  %3483 = vst [vmem:[#allocation22_spill] sm:$0xff] %v3280_v55  ;;  %v1269_v58 = vmax.f32 %v3104_v1, 0.0  ;;  %v1270_v55 = vmax.f32 %v3108_v24, 0.0  ;;  %v1271_v60 = vmax.f32 %v3112_v38, 0.0  ;;  %v1272_v47 = vmax.f32 %v3116_v21, 0.0 }
 0x259   :  { %3484 = vst [vmem:[#allocation19_spill] sm:$0xff] %v3283_v22  ;;  %v1273_v54 = vmax.f32 %v3120_v19, 0.0  ;;  %v1274_v49 = vmax.f32 %v3124_v63, 0.0  ;;  %v1275_v44 = vmax.f32 %v3128_v14, 0.0  ;;  %v1276_v31 = vmax.f32 %v3132_v41, 0.0  ;;  %v3485_v50 = vld [vmem:[#allocation25_spill] sm:$0xff] }
 0x25a   :  { %v1277_v11 = vmax.f32 %v3485_v50, 0.0  ;;  %v3486_v22 = vld [vmem:[#allocation11_spill] sm:$0xff]  ;;  %v3487_v48 = vld [vmem:[#allocation13_spill] sm:$0xff]  ;;  %v3488_v46 = vld [vmem:[#allocation12_spill] sm:$0xff]  ;;  %v1281_v38 = vmax.f32 %v3489_v7, 0.0  ;;  %v1282_v21 = vmax.f32 %v3156_v27, 0.0 }
 0x25b   :  { %v1278_v42 = vmax.f32 %v3486_v22, 0.0  ;;  %v1279_v1 = vmax.f32 %v3487_v48, 0.0  ;;  %v1280_v24 = vmax.f32 %v3488_v46, 0.0  ;;  %v1283_v19 = vmax.f32 %v3160_v34, 0.0  ;;  %v3490_v29 = vld [vmem:[#allocation26_spill] sm:$0xff] }
 0x25c   :  { %v1284_v63 = vmax.f32 %v3490_v29, 0.0  ;;  %v1285_v14 = vmax.f32 %v3168_v56, 0.0  ;;  %v1286_v41 = vmax.f32 %v3172_v4, 0.0  ;;  %v1287_v50 = vmax.f32 %v3175_v17, 0.0 }
 0x25d   :  { %v1288_v22 = vmax.f32 %v3178_v37, 0.0  ;;  %v1289_v48 = vmax.f32 %v3181_v40, 0.0  ;;  %v1290_v46 = vmax.f32 %v3184_v36, 0.0  ;;  %v1291_v7 = vmax.f32 %v3187_v51, 0.0 }
 0x25e   :  { %v1292_v27 = vmax.f32 %v3190_v43, 0.0  ;;  %v1293_v34 = vmax.f32 %v3193_v12, 0.0  ;;  %v1294_v29 = vmax.f32 %v3196_v52, 0.0  ;;  %v1295_v56 = vmax.f32 %v3199_v59, 0.0 }
 0x25f   :  { %v1296_v4 = vmax.f32 %v3202_v16, 0.0  ;;  %v1297_v17 = vmax.f32 %v3205_v0, 0.0  ;;  %v1298_v37 = vmax.f32 %v3208_v57, 0.0  ;;  %v1299_v40 = vmax.f32 %v3211_v62, 0.0 }
 0x260   :  { %v1300_v36 = vmax.f32 %v3214_v9, 0.0  ;;  %v1301_v51 = vmax.f32 %v3217_v5, 0.0  ;;  %v1302_v43 = vmax.f32 %v3220_v10, 0.0  ;;  %v1303_v12 = vmax.f32 %v3223_v3, 0.0 }
 0x261   :  { %v1304_v52 = vmax.f32 %v3226_v8, 0.0  ;;  %v1305_v59 = vmax.f32 %v3229_v15, 0.0  ;;  %v1306_v16 = vmax.f32 %v3232_v20, 0.0  ;;  %v1307_v0 = vmax.f32 %v3235_v13, 0.0  ;;  %v3491_v20 = vld [vmem:[#allocation14_spill] sm:$0xff] }
 0x262   :  { %v1308_v57 = vmax.f32 %v3238_v18, 0.0  ;;  %v1309_v62 = vmax.f32 %v3241_v25, 0.0  ;;  %v1310_v9 = vmax.f32 %v3244_v30, 0.0  ;;  %v1311_v5 = vmax.f32 %v3247_v23, 0.0  ;;  %v3492_v18 = vld [vmem:[#allocation27_spill] sm:$0xff]  ;;  %v3493_v30 = vld [vmem:[#allocation18_spill] sm:$0xff] }
 0x263   :  { %v1312_v10 = vmax.f32 %v3250_v28, 0.0  ;;  %v1313_v3 = vmax.f32 %v3253_v35, 0.0  ;;  %v1314_v8 = vmax.f32 %v3256_v33, 0.0  ;;  %v1315_v15 = vmax.f32 %v3259_v45, 0.0  ;;  %v3494_v28 = vld [vmem:[#allocation16_spill] sm:$0xff]  ;;  %v3495_v33 = vld [vmem:[#allocation17_spill] sm:$0xff] }
 0x264   :  { %v1316_v13 = vmax.f32 %v3491_v20, 0.0  ;;  %v1317_v25 = vmax.f32 %v3492_v18, 0.0  ;;  %v1318_v23 = vmax.f32 %v3493_v30, 0.0  ;;  %v1319_v35 = vmax.f32 %v3494_v28, 0.0  ;;  %v3496_v20 = vld [vmem:[#allocation20_spill] sm:$0xff]  ;;  %v3497_v30 = vld [vmem:[#allocation22_spill] sm:$0xff] }
 0x265   :  { %v1320_v45 = vmax.f32 %v3495_v33, 0.0  ;;  %v1321_v18 = vmax.f32 %v3496_v20, 0.0  ;;  %v1324_v28 = vmax.f32 %v3497_v30, 0.0  ;;  %v3498_v33 = vld [vmem:[#allocation19_spill] sm:$0xff]  ;;  %v1836_v30 = vpack.c.bf16 %v1263_v61, %v1262_v6 }
 0x266   :  { %v1325_v20 = vmax.f32 %v3498_v33, 0.0  ;;  %v1841_v33 = vpack.c.bf16 %v1265_v32, %v1264_v2  ;;  %v1846_v6 = vpack.c.bf16 %v1267_v53, %v1266_v26  ;;  %v1851_v61 = vpack.c.bf16 %v1269_v58, %v1268_v39 }
 0x267   :  { %v1856_v2 = vpack.c.bf16 %v1271_v60, %v1270_v55  ;;  %v1861_v32 = vpack.c.bf16 %v1273_v54, %v1272_v47  ;;  %v1866_v26 = vpack.c.bf16 %v1275_v44, %v1274_v49  ;;  %1837 = vst [vmem:[#allocation7] sm:$0xff] %v1836_v30   ;;  %v1871_v53 = vpack.c.bf16 %v1277_v11, %v1276_v31 }
 0x268   :  { %1993 = vst [vmem:[#allocation7 + $0x8] sm:$0xff] %v1841_v33   ;;  %1994 = vst [vmem:[#allocation7 + $0x10] sm:$0xff] %v1846_v6   ;;  %v1876_v39 = vpack.c.bf16 %v1279_v1, %v1278_v42  ;;  %v1881_v58 = vpack.c.bf16 %v1281_v38, %v1280_v24  ;;  %v1886_v55 = vpack.c.bf16 %v1283_v19, %v1282_v21 }
 0x269   :  { %1995 = vst [vmem:[#allocation7 + $0x18] sm:$0xff] %v1851_v61   ;;  %1996 = vst [vmem:[#allocation7 + $0x20] sm:$0xff] %v1856_v2   ;;  %v1891_v60 = vpack.c.bf16 %v1285_v14, %v1284_v63  ;;  %v1896_v47 = vpack.c.bf16 %v1287_v50, %v1286_v41  ;;  %v1901_v54 = vpack.c.bf16 %v1289_v48, %v1288_v22 }
 0x26a   :  { %1997 = vst [vmem:[#allocation7 + $0x28] sm:$0xff] %v1861_v32   ;;  %1998 = vst [vmem:[#allocation7 + $0x30] sm:$0xff] %v1866_v26   ;;  %v1906_v44 = vpack.c.bf16 %v1291_v7, %v1290_v46  ;;  %v1911_v49 = vpack.c.bf16 %v1293_v34, %v1292_v27  ;;  %v1916_v30 = vpack.c.bf16 %v1295_v56, %v1294_v29 }
 0x26b   :  { %1999 = vst [vmem:[#allocation7 + $0x38] sm:$0xff] %v1871_v53   ;;  %2000 = vst [vmem:[#allocation7 + $0x40] sm:$0xff] %v1876_v39   ;;  %v1921_v33 = vpack.c.bf16 %v1297_v17, %v1296_v4  ;;  %v1926_v6 = vpack.c.bf16 %v1299_v40, %v1298_v37  ;;  %v1931_v31 = vpack.c.bf16 %v1301_v51, %v1300_v36 }
 0x26c   :  { %2001 = vst [vmem:[#allocation7 + $0x48] sm:$0xff] %v1881_v58   ;;  %2002 = vst [vmem:[#allocation7 + $0x50] sm:$0xff] %v1886_v55   ;;  %v1936_v11 = vpack.c.bf16 %v1303_v12, %v1302_v43  ;;  %v1941_v42 = vpack.c.bf16 %v1305_v59, %v1304_v52  ;;  %v1946_v1 = vpack.c.bf16 %v1307_v0, %v1306_v16 }
 0x26d   :  { %2003 = vst [vmem:[#allocation7 + $0x58] sm:$0xff] %v1891_v60   ;;  %2004 = vst [vmem:[#allocation7 + $0x60] sm:$0xff] %v1896_v47   ;;  %v1951_v24 = vpack.c.bf16 %v1309_v62, %v1308_v57  ;;  %v1956_v38 = vpack.c.bf16 %v1311_v5, %v1310_v9  ;;  %v1961_v21 = vpack.c.bf16 %v1313_v3, %v1312_v10 }
 0x26e   :  { %2005 = vst [vmem:[#allocation7 + $0x68] sm:$0xff] %v1901_v54   ;;  %2006 = vst [vmem:[#allocation7 + $0x70] sm:$0xff] %v1906_v44   ;;  %v1966_v19 = vpack.c.bf16 %v1315_v15, %v1314_v8  ;;  %v1971_v63 = vpack.c.bf16 %v1317_v25, %v1316_v13  ;;  %v1976_v14 = vpack.c.bf16 %v1319_v35, %v1318_v23 }
 0x26f   :  { %2007 = vst [vmem:[#allocation7 + $0x78] sm:$0xff] %v1911_v49   ;;  %2008 = vst [vmem:[#allocation7 + $0x80] sm:$0xff] %v1916_v30   ;;  %v1981_v41 = vpack.c.bf16 %v1321_v18, %v1320_v45  ;;  %v1991_v50 = vpack.c.bf16 %v1325_v20, %v1324_v28 }
 0x270   :  { %2009 = vst [vmem:[#allocation7 + $0x88] sm:$0xff] %v1921_v33   ;;  %2010 = vst [vmem:[#allocation7 + $0x90] sm:$0xff] %v1926_v6  }
 0x271   :  { %2011 = vst [vmem:[#allocation7 + $0x98] sm:$0xff] %v1931_v31   ;;  %2012 = vst [vmem:[#allocation7 + $0xa0] sm:$0xff] %v1936_v11  }
 0x272   :  { %2013 = vst [vmem:[#allocation7 + $0xa8] sm:$0xff] %v1941_v42   ;;  %2014 = vst [vmem:[#allocation7 + $0xb0] sm:$0xff] %v1946_v1  }
 0x273   :  { %2015 = vst [vmem:[#allocation7 + $0xb8] sm:$0xff] %v1951_v24   ;;  %2016 = vst [vmem:[#allocation7 + $0xc0] sm:$0xff] %v1956_v38  }
 0x274   :  { %2017 = vst [vmem:[#allocation7 + $0xc8] sm:$0xff] %v1961_v21   ;;  %2018 = vst [vmem:[#allocation7 + $0xd0] sm:$0xff] %v1966_v19  }
 0x275   :  { %2019 = vst [vmem:[#allocation7 + $0xd8] sm:$0xff] %v1971_v63   ;;  %2020 = vst [vmem:[#allocation7 + $0xe0] sm:$0xff] %v1976_v14  }
 0x276   :  { %2021 = vst [vmem:[#allocation7 + $0xe8] sm:$0xff] %v1981_v41   ;;  %2023 = vst [vmem:[#allocation7 + $0xf8] sm:$0xff] %v1991_v50  }
 0x277   :  { %2258 = shalt.err (!%p2255_p0)
}
 0x278   :  { %1657 = dma.vmem_to_hbm [thread:$0]  %s1652_s3, 4096, %s3357_s4, [#allocation4], %s2274_s18, %s2274_s18, %s2275_s19  }
 0x279   :  { %2271 = dma.done.wait [#allocation4], 4096  }
 0x27a   :  { %2272 = vsyncadd [#allocation4], 4294963200 }
 0x27b   :  { %1661 = vsyncpa [#allocation3], 1 }
 0x27c   :  { %1662 = vsyncpa [#allocation6], 1 }
 0x27d   :  { %1663 = vsyncpa [#allocation4], 1 }

</bundles_post_ra>
